<compile_context>
chip_gen: v5e
topology: v5e:2x2
jax: 0.10.0
libtpu: 0.0.40
codegen_flags: <defaults>
</compile_context>

<pallas_src>
import functools

import jax
import jax.numpy as jnp
from jax import lax
from jax.experimental import pallas as pl
from jax.experimental.pallas import tpu as pltpu


_LANE = 128          # TPU lane width; feature dims are zero-padded to this
_FULL_UNROLL = 16    # hidden-layer depth up to which the layer chain is unrolled


def _round_up(x, m):
    return (x + m - 1) // m * m


# ---------------------------------------------------------------------------
# Kernels
# ---------------------------------------------------------------------------
def _stack_kernel_resident(x_ref, w_in_ref, b_in_ref, ws_ref, w_out_ref,
                           b_out_ref, o_ref, h_ref, *, num_layers):
    """All weights VMEM-resident; h kept in an explicit f32 VMEM scratch."""
    cdt = w_in_ref.dtype  # compute dtype (bf16); accumulation is always f32

    # Input layer: x @ W_in + b_in (f32 accumulation on the MXU).
    h_ref[...] = (
        jnp.dot(x_ref[...], w_in_ref[...], preferred_element_type=jnp.float32)
        + b_in_ref[...].astype(jnp.float32))

    # Bias-free hidden layers.
    if 0 < num_layers <= _FULL_UNROLL:
        # Small static depth: fully unroll (LLO scheduler visibility).
        for l in range(num_layers):
            h_ref[...] = jnp.dot(h_ref[...].astype(cdt), ws_ref[l],
                                 preferred_element_type=jnp.float32)
    elif num_layers > _FULL_UNROLL:
        # Deep stacks: fori_loop with partial unroll so the dynamic ws_ref[l+1]
        # load overlaps layer l's matmul instead of sitting on the serial path.
        def body(l, carry):
            h_ref[...] = jnp.dot(h_ref[...].astype(cdt), ws_ref[l],
                                 preferred_element_type=jnp.float32)
            return carry
        lax.fori_loop(0, num_layers, body, 0, unroll=4)

    # Output layer: h @ W_out + b_out.
    o_ref[...] = (
        jnp.dot(h_ref[...].astype(cdt), w_out_ref[...],
                preferred_element_type=jnp.float32)
        + b_out_ref[...].astype(jnp.float32)).astype(o_ref.dtype)


def _stack_kernel_streamed(x_ref, w_in_ref, b_in_ref, ws_hbm, w_out_ref,
                           b_out_ref, o_ref, h_ref, wbuf_ref, sem_ref,
                           *, num_layers):
    """Hidden-layer weights streamed from HBM with a 2-slot double buffer.

    Used when num_layers * hidden^2 exceeds the per-generation VMEM budget
    (primarily v7x with its 64 MiB VMEM). Each layer's DMA is hidden behind
    the previous layer's matmul.
    """
    cdt = w_in_ref.dtype

    if num_layers > 0:
        # Prefetch layer-0 weights; the input-layer matmul hides the DMA.
        pltpu.make_async_copy(ws_hbm.at[0], wbuf_ref.at[0], sem_ref.at[0]).start()

    h_ref[...] = (
        jnp.dot(x_ref[...], w_in_ref[...], preferred_element_type=jnp.float32)
        + b_in_ref[...].astype(jnp.float32))

    if num_layers > 0:
        @pl.loop(0, num_layers)
        def _(l):
            slot = l % 2
            pltpu.make_async_copy(ws_hbm.at[l], wbuf_ref.at[slot],
                                  sem_ref.at[slot]).wait()

            @pl.when(l + 1 < num_layers)
            def _prefetch_next():
                nxt = 1 - slot
                pltpu.make_async_copy(ws_hbm.at[l + 1], wbuf_ref.at[nxt],
                                      sem_ref.at[nxt]).start()

            h_ref[...] = jnp.dot(h_ref[...].astype(cdt), wbuf_ref[slot],
                                 preferred_element_type=jnp.float32)

    o_ref[...] = (
        jnp.dot(h_ref[...].astype(cdt), w_out_ref[...],
                preferred_element_type=jnp.float32)
        + b_out_ref[...].astype(jnp.float32)).astype(o_ref.dtype)


# ---------------------------------------------------------------------------
# Wrapper helpers
# ---------------------------------------------------------------------------
def _vmem_budget_bytes():
    """Per-generation VMEM budget: physical capacity minus Mosaic headroom.

    v5e/v6e (128 MiB) -> ~112 MiB; v7x (64 MiB per TensorCore) -> ~52 MiB.
    Falls back to the v7x-safe figure if the hardware query is unavailable.
    """
    cap = 64 << 20
    try:
        info = pltpu.get_tpu_info()
        cap = int(getattr(info, "vmem_capacity_bytes", cap)) or cap
    except Exception:
        pass
    return max(32 << 20, min(cap - (12 << 20), cap * 7 // 8))


def _choose_bm(batch, block_m):
    """Batch tile size: >=2 grid steps (v7x dual-TC) with minimal padding waste."""
    block_m = max(8, _round_up(block_m, 8))
    padded8 = _round_up(max(batch, 1), 8)
    if padded8 >= 16:
        n_steps = max(2, pl.cdiv(padded8, block_m))
        bm = _round_up(pl.cdiv(padded8, n_steps), 8)
    else:
        bm = padded8
    bm = min(bm, block_m)
    padded_batch = _round_up(batch, bm)
    return bm, padded_batch


def _invariant_spec(block_shape, index_map, *, single_buffer):
    """BlockSpec for grid-invariant operands (constant index_map).

    With single_buffer=True we request a single VMEM buffer (pl.Buffered(1));
    the default double-buffering would hold a useless second copy of the
    weight stack in VMEM.
    """
    if single_buffer and hasattr(pl, "Buffered"):
        return pl.BlockSpec(block_shape, index_map, pipeline_mode=pl.Buffered(1))
    return pl.BlockSpec(block_shape, index_map)


def prepare_params(params, *, compute_dtype=jnp.bfloat16):
    """Pad feature dims to the 128-lane width and cast to bf16 ONCE (at init).

    Doing this per forward call would re-materialize (and re-read/write) the
    entire weight stack in HBM on every step.
    Weights are stored as [in, out] (torch weight transposed) so the kernel
    computes plain x @ W.
    """
    w_in, b_in = params["w_in"], params["b_in"]
    ws, w_out, b_out = params["ws"], params["w_out"], params["b_out"]
    input_dim, hidden_dim = w_in.shape
    output_dim = w_out.shape[1]
    num_layers = ws.shape[0]
    d_in = _round_up(input_dim, _LANE)
    d_h = _round_up(hidden_dim, _LANE)
    d_out = _round_up(output_dim, _LANE)
    cdt = compute_dtype

    if num_layers > 0:
        ws_p = jnp.pad(ws, ((0, 0), (0, d_h - hidden_dim),
                            (0, d_h - hidden_dim))).astype(cdt)
    else:  # dummy slab keeps the BlockSpec plumbing simple; never read.
        ws_p = jnp.zeros((1, d_h, d_h), cdt)

    return dict(
        w_in=jnp.pad(w_in, ((0, d_in - input_dim),
                            (0, d_h - hidden_dim))).astype(cdt),
        b_in=jnp.pad(b_in, ((0, 0), (0, d_h - hidden_dim))).astype(jnp.float32),
        ws=ws_p,
        w_out=jnp.pad(w_out, ((0, d_h - hidden_dim),
                              (0, d_out - output_dim))).astype(cdt),
        b_out=jnp.pad(b_out, ((0, 0), (0, d_out - output_dim))).astype(jnp.float32),
        input_dim=input_dim, hidden_dim=hidden_dim, output_dim=output_dim,
        num_layers=num_layers, compute_dtype=cdt,
    )


# ---------------------------------------------------------------------------
# Forward
# ---------------------------------------------------------------------------
def linear_stack_forward(x, y, prepped, *, block_m=512, out_dtype=None,
                         stream_weights=None):
    """Pallas implementation of LinearStack.forward(x, y).

    `prepped` comes from prepare_params(). `y` is accepted for signature parity
    with the torch module; forward ignores it. `stream_weights=None` picks
    automatically based on the per-generation VMEM budget.
    """
    del y  # unused by LinearStack.forward
    input_dim = prepped["input_dim"]
    output_dim = prepped["output_dim"]
    num_layers = prepped["num_layers"]
    cdt = prepped["compute_dtype"]
    w_in_p, b_in_p = prepped["w_in"], prepped["b_in"]
    ws_p, w_out_p, b_out_p = prepped["ws"], prepped["w_out"], prepped["b_out"]

    batch = x.shape[0]
    assert x.shape[1] == input_dim, "x feature dim mismatch"
    out_dtype = x.dtype if out_dtype is None else out_dtype

    d_in, d_h = w_in_p.shape
    d_out = w_out_p.shape[1]
    n_ws = ws_p.shape[0]

    bm, padded_batch = _choose_bm(batch, block_m)
    grid_m = padded_batch // bm

    # Only the activation is padded per call (input-dependent, cheap).
    xp = jnp.pad(x, ((0, padded_batch - batch),
                     (0, d_in - input_dim))).astype(cdt)

    cdt_bytes = jnp.dtype(cdt).itemsize
    out_bytes = jnp.dtype(out_dtype).itemsize

    # --- VMEM accounting (single-buffered invariant weights) ---------------
    fixed_vmem = ((w_in_p.size + w_out_p.size) * cdt_bytes
                  + (b_in_p.size + b_out_p.size) * 4
                  + 2 * (bm * d_in * cdt_bytes + bm * d_out * out_bytes)  # x/out
                  + bm * d_h * 4                                          # h scratch
                  + (4 << 20))                                            # headroom
    ws_resident_vmem = ws_p.size * cdt_bytes
    budget = _vmem_budget_bytes()
    if stream_weights is None:
        stream_weights = (num_layers > 0
                          and fixed_vmem + ws_resident_vmem > budget)
    if num_layers == 0:
        stream_weights = False

    # --- Advisory cost estimate for XLA's scheduler -------------------------
    flops = 2 * padded_batch * (d_in * d_h + num_layers * d_h * d_h + d_h * d_out)
    ws_hbm_bytes = ws_p.size * cdt_bytes * (grid_m if stream_weights else 1)
    bytes_accessed = int(padded_batch * d_in * cdt_bytes
                         + (w_in_p.size + w_out_p.size) * cdt_bytes
                         + (b_in_p.size + b_out_p.size) * 4
                         + ws_hbm_bytes
                         + padded_batch * d_out * out_bytes)
    cost = pl.CostEstimate(flops=flops, transcendentals=0,
                           bytes_accessed=bytes_accessed)

    cparams = pltpu.CompilerParams(
        # "parallel" lets the runtime shard the batch grid axis across
        # TensorCores on multi-TC parts (v7x); harmless on v5e/v6e.
        dimension_semantics=("parallel",),
        vmem_limit_bytes=int(budget),
    )

    def run(single_buffer_weights):
        inv = functools.partial(_invariant_spec,
                                single_buffer=single_buffer_weights)
        in_specs = [
            pl.BlockSpec((bm, d_in), lambda i: (i, 0)),            # x tile (streamed)
            inv((d_in, d_h), lambda i: (0, 0)),                    # w_in (invariant)
            inv((1, d_h), lambda i: (0, 0)),                       # b_in
            (pl.BlockSpec(memory_space=pl.ANY) if stream_weights
             else inv((n_ws, d_h, d_h), lambda i: (0, 0, 0))),     # ws
            inv((d_h, d_out), lambda i: (0, 0)),                   # w_out
            inv((1, d_out), lambda i: (0, 0)),                     # b_out
        ]
        scratch = [pltpu.VMEM((bm, d_h), jnp.float32)]             # f32 activation
        if stream_weights:
            scratch += [pltpu.VMEM((2, d_h, d_h), cdt),            # weight dbl-buf
                        pltpu.SemaphoreType.DMA((2,))]
            kernel = functools.partial(_stack_kernel_streamed,
                                       num_layers=num_layers)
        else:
            kernel = functools.partial(_stack_kernel_resident,
                                       num_layers=num_layers)
        return pl.pallas_call(
            kernel,
            out_shape=jax.ShapeDtypeStruct((padded_batch, d_out), out_dtype),
            grid_spec=pltpu.PrefetchScalarGridSpec(
                num_scalar_prefetch=0,
                grid=(grid_m,),
                in_specs=in_specs,
                out_specs=pl.BlockSpec((bm, d_out), lambda i: (i, 0)),
                scratch_shapes=scratch,
            ),
            compiler_params=cparams,
            cost_estimate=cost,
        )(xp, w_in_p, b_in_p, ws_p, w_out_p, b_out_p)

    if hasattr(pl, "Buffered"):
        try:
            out_padded = run(True)
        except Exception:
            # Fallback if this jax build rejects Buffered(1) invariant blocks.
            out_padded = run(False)
    else:
        out_padded = run(False)

    return out_padded[:batch, :output_dim]


# ---------------------------------------------------------------------------
# Init + reference
# ---------------------------------------------------------------------------
def init_params(key, input_dim, hidden_dim, output_dim, num_layers):
    """Deterministic parameter init (stand-in for torch's default init)."""
    ks = jax.random.split(key, 5)
    # Weights stored as [in, out] (torch weight transposed).
    w_in = jax.random.normal(ks[0], (input_dim, hidden_dim), jnp.float32) * 0.05
    b_in = jax.random.normal(ks[1], (1, hidden_dim), jnp.float32) * 0.05
    ws = jax.random.normal(ks[2], (num_layers, hidden_dim, hidden_dim),
                           jnp.float32) * 0.05
    w_out = jax.random.normal(ks[3], (hidden_dim, output_dim), jnp.float32) * 0.05
    b_out = jax.random.normal(ks[4], (1, output_dim), jnp.float32) * 0.05
    return dict(w_in=w_in, b_in=b_in, ws=ws, w_out=w_out, b_out=b_out)


def reference_forward(x, params, num_layers, compute_dtype=None):
    """Pure-JAX reference. If compute_dtype is set, mirrors the kernel's casts."""
    cast = (lambda a: a) if compute_dtype is None else (lambda a: a.astype(compute_dtype))
    h = jnp.dot(cast(x), cast(params["w_in"]),
                preferred_element_type=jnp.float32) + params["b_in"]
    for l in range(num_layers):
        h = jnp.dot(cast(h), cast(params["ws"][l]),
                    preferred_element_type=jnp.float32)
    return jnp.dot(cast(h), cast(params["w_out"]),
                   preferred_element_type=jnp.float32) + params["b_out"]


# ---------------------------------------------------------------------------
if __name__ == "__main__":
    # Module-default feature dims (128 = lane width). batch=512 -> 2 grid steps
    # of 256 rows (keeps both v7x TensorCores busy; negligible cost on v5e/v6e).
    batch = 512
    input_dim = hidden_dim = output_dim = 128
    num_layers = 4

    key = jax.random.PRNGKey(0)
    kx, ky, kp = jax.random.split(key, 3)
    x = jax.random.normal(kx, (batch, input_dim), jnp.float32)
    y = jax.random.randint(ky, (batch,), 0, output_dim)   # unused, signature parity
    params = init_params(kp, input_dim, hidden_dim, output_dim, num_layers)
    prepped = prepare_params(params)                       # pad + cast ONCE

    out = jax.block_until_ready(linear_stack_forward(x, y, prepped))
    assert out.shape == (batch, output_dim)

    # Tight check vs a reference that mirrors the kernel's bf16-input / f32-acc path.
    ref_bf16 = reference_forward(x, params, num_layers, compute_dtype=jnp.bfloat16)
    assert jnp.allclose(out, ref_bf16, atol=2e-3, rtol=2e-3), \
        "mismatch vs bf16-compute reference"
    # Loose sanity check vs the full-f32 reference (bf16 precision tradeoff).
    ref_f32 = reference_forward(x, params, num_layers)
    assert jnp.allclose(out, ref_f32, atol=2e-2, rtol=2e-2), \
        "mismatch vs f32 reference"

    # Exercise the HBM-streamed-weights path (auto-selected when the resident
    # weight stack would exceed the per-generation VMEM budget, e.g. on v7x).
    out_stream = jax.block_until_ready(
        linear_stack_forward(x, y, prepped, stream_weights=True))
    assert jnp.allclose(out_stream, out, atol=1e-4, rtol=1e-4), \
        "streamed-weights path mismatch vs resident path"

    # Non-multiple-of-128 dims / odd batch exercise the zero-padding path.
    ip2, hp2, op2, L2 = 96, 160, 72, 3
    k2x, k2p = jax.random.split(jax.random.PRNGKey(1))
    x2 = jax.random.normal(k2x, (100, ip2), jnp.float32)
    params2 = init_params(k2p, ip2, hp2, op2, L2)
    prepped2 = prepare_params(params2)
    out2 = jax.block_until_ready(linear_stack_forward(x2, None, prepped2))
    assert out2.shape == (100, op2)
    ref2 = reference_forward(x2, params2, L2, compute_dtype=jnp.bfloat16)
    assert jnp.allclose(out2, ref2, atol=2e-3, rtol=2e-3), \
        "mismatch on padded (non-128-aligned) configuration"

    print("KERNEL_OK")
</pallas_src>

<mosaic_0001>
module attributes {stable_mosaic.version = 11 : i64} {
  func.func @_stack_kernel_resident(%arg0: i32, %arg1: memref<256x128xbf16, #tpu.memory_space<vmem>>, %arg2: memref<128x128xbf16, #tpu.memory_space<vmem>>, %arg3: memref<1x128xf32, #tpu.memory_space<vmem>>, %arg4: memref<4x128x128xbf16, #tpu.memory_space<vmem>>, %arg5: memref<128x128xbf16, #tpu.memory_space<vmem>>, %arg6: memref<1x128xf32, #tpu.memory_space<vmem>>, %arg7: memref<256x128xf32, #tpu.memory_space<vmem>>, %arg8: memref<256x128xf32, #tpu.memory_space<vmem>>) attributes {dimension_semantics = [#tpu.dimension_semantics<parallel>], iteration_bounds = array<i64: 2>, scalar_prefetch = 0 : i64, scratch_operands = 1 : i64, tpu.core_type = #tpu.core_type<tc>, window_params = [{transform_indices = @transform_0, window_bounds = array<i64: 256, 128>}, {pipeline_mode = #tpu.pipeline_mode<synchronous>, transform_indices = @transform_1, window_bounds = array<i64: 128, 128>}, {pipeline_mode = #tpu.pipeline_mode<synchronous>, transform_indices = @transform_2, window_bounds = array<i64: 1, 128>}, {pipeline_mode = #tpu.pipeline_mode<synchronous>, transform_indices = @transform_3, window_bounds = array<i64: 4, 128, 128>}, {pipeline_mode = #tpu.pipeline_mode<synchronous>, transform_indices = @transform_4, window_bounds = array<i64: 128, 128>}, {pipeline_mode = #tpu.pipeline_mode<synchronous>, transform_indices = @transform_5, window_bounds = array<i64: 1, 128>}, {transform_indices = @transform_6, window_bounds = array<i64: 256, 128>}]} {
    %c0 = arith.constant 0 : index
    %c0_0 = arith.constant 0 : index
    %0 = vector.load %arg1[%c0, %c0_0] : memref<256x128xbf16, #tpu.memory_space<vmem>>, vector<256x128xbf16>
    %c0_1 = arith.constant 0 : index
    %c0_2 = arith.constant 0 : index
    %1 = vector.load %arg2[%c0_1, %c0_2] : memref<128x128xbf16, #tpu.memory_space<vmem>>, vector<128x128xbf16>
    %cst = arith.constant dense<0.000000e+00> : vector<256x128xf32>
    %2 = tpu.matmul %0, %1, %cst {dimension_numbers = #tpu.dot_dimension_numbers<[1], [0], [0], [1], [0, 0, 1, 1], [], []>} : vector<256x128xbf16>, vector<128x128xbf16>, vector<256x128xf32> -> vector<256x128xf32>
    %c0_3 = arith.constant 0 : index
    %c0_4 = arith.constant 0 : index
    %3 = vector.load %arg3[%c0_3, %c0_4] : memref<1x128xf32, #tpu.memory_space<vmem>>, vector<1x128xf32>
    %4 = vector.broadcast %3 : vector<1x128xf32> to vector<256x128xf32>
    %5 = arith.addf %2, %4 : vector<256x128xf32>
    %c0_5 = arith.constant 0 : index
    %c0_6 = arith.constant 0 : index
    %6 = vector.load %arg8[%c0_5, %c0_6] : memref<256x128xf32, #tpu.memory_space<vmem>>, vector<256x128xf32>
    tpu.vector_store %arg8[%c0_5, %c0_6], %5 {strides = array<i32>} : memref<256x128xf32, #tpu.memory_space<vmem>>, vector<256x128xf32>,
    %c0_7 = arith.constant 0 : index
    %c0_8 = arith.constant 0 : index
    %7 = vector.load %arg8[%c0_7, %c0_8] : memref<256x128xf32, #tpu.memory_space<vmem>>, vector<256x128xf32>
    %8 = arith.truncf %7 : vector<256x128xf32> to vector<256x128xbf16>
    %c0_9 = arith.constant 0 : index
    %c0_10 = arith.constant 0 : index
    %c0_11 = arith.constant 0 : index
    %9 = vector.load %arg4[%c0_9, %c0_10, %c0_11] : memref<4x128x128xbf16, #tpu.memory_space<vmem>>, vector<1x128x128xbf16>
    %10 = vector.shape_cast %9 : vector<1x128x128xbf16> to vector<128x128xbf16>
    %cst_12 = arith.constant dense<0.000000e+00> : vector<256x128xf32>
    %11 = tpu.matmul %8, %10, %cst_12 {dimension_numbers = #tpu.dot_dimension_numbers<[1], [0], [0], [1], [0, 0, 1, 1], [], []>} : vector<256x128xbf16>, vector<128x128xbf16>, vector<256x128xf32> -> vector<256x128xf32>
    %c0_13 = arith.constant 0 : index
    %c0_14 = arith.constant 0 : index
    %12 = vector.load %arg8[%c0_13, %c0_14] : memref<256x128xf32, #tpu.memory_space<vmem>>, vector<256x128xf32>
    tpu.vector_store %arg8[%c0_13, %c0_14], %11 {strides = array<i32>} : memref<256x128xf32, #tpu.memory_space<vmem>>, vector<256x128xf32>,
    %c0_15 = arith.constant 0 : index
    %c0_16 = arith.constant 0 : index
    %13 = vector.load %arg8[%c0_15, %c0_16] : memref<256x128xf32, #tpu.memory_space<vmem>>, vector<256x128xf32>
    %14 = arith.truncf %13 : vector<256x128xf32> to vector<256x128xbf16>
    %c1 = arith.constant 1 : index
    %c0_17 = arith.constant 0 : index
    %c0_18 = arith.constant 0 : index
    %15 = vector.load %arg4[%c1, %c0_17, %c0_18] : memref<4x128x128xbf16, #tpu.memory_space<vmem>>, vector<1x128x128xbf16>
    %16 = vector.shape_cast %15 : vector<1x128x128xbf16> to vector<128x128xbf16>
    %cst_19 = arith.constant dense<0.000000e+00> : vector<256x128xf32>
    %17 = tpu.matmul %14, %16, %cst_19 {dimension_numbers = #tpu.dot_dimension_numbers<[1], [0], [0], [1], [0, 0, 1, 1], [], []>} : vector<256x128xbf16>, vector<128x128xbf16>, vector<256x128xf32> -> vector<256x128xf32>
    %c0_20 = arith.constant 0 : index
    %c0_21 = arith.constant 0 : index
    %18 = vector.load %arg8[%c0_20, %c0_21] : memref<256x128xf32, #tpu.memory_space<vmem>>, vector<256x128xf32>
    tpu.vector_store %arg8[%c0_20, %c0_21], %17 {strides = array<i32>} : memref<256x128xf32, #tpu.memory_space<vmem>>, vector<256x128xf32>,
    %c0_22 = arith.constant 0 : index
    %c0_23 = arith.constant 0 : index
    %19 = vector.load %arg8[%c0_22, %c0_23] : memref<256x128xf32, #tpu.memory_space<vmem>>, vector<256x128xf32>
    %20 = arith.truncf %19 : vector<256x128xf32> to vector<256x128xbf16>
    %c2 = arith.constant 2 : index
    %c0_24 = arith.constant 0 : index
    %c0_25 = arith.constant 0 : index
    %21 = vector.load %arg4[%c2, %c0_24, %c0_25] : memref<4x128x128xbf16, #tpu.memory_space<vmem>>, vector<1x128x128xbf16>
    %22 = vector.shape_cast %21 : vector<1x128x128xbf16> to vector<128x128xbf16>
    %cst_26 = arith.constant dense<0.000000e+00> : vector<256x128xf32>
    %23 = tpu.matmul %20, %22, %cst_26 {dimension_numbers = #tpu.dot_dimension_numbers<[1], [0], [0], [1], [0, 0, 1, 1], [], []>} : vector<256x128xbf16>, vector<128x128xbf16>, vector<256x128xf32> -> vector<256x128xf32>
    %c0_27 = arith.constant 0 : index
    %c0_28 = arith.constant 0 : index
    %24 = vector.load %arg8[%c0_27, %c0_28] : memref<256x128xf32, #tpu.memory_space<vmem>>, vector<256x128xf32>
    tpu.vector_store %arg8[%c0_27, %c0_28], %23 {strides = array<i32>} : memref<256x128xf32, #tpu.memory_space<vmem>>, vector<256x128xf32>,
    %c0_29 = arith.constant 0 : index
    %c0_30 = arith.constant 0 : index
    %25 = vector.load %arg8[%c0_29, %c0_30] : memref<256x128xf32, #tpu.memory_space<vmem>>, vector<256x128xf32>
    %26 = arith.truncf %25 : vector<256x128xf32> to vector<256x128xbf16>
    %c3 = arith.constant 3 : index
    %c0_31 = arith.constant 0 : index
    %c0_32 = arith.constant 0 : index
    %27 = vector.load %arg4[%c3, %c0_31, %c0_32] : memref<4x128x128xbf16, #tpu.memory_space<vmem>>, vector<1x128x128xbf16>
    %28 = vector.shape_cast %27 : vector<1x128x128xbf16> to vector<128x128xbf16>
    %cst_33 = arith.constant dense<0.000000e+00> : vector<256x128xf32>
    %29 = tpu.matmul %26, %28, %cst_33 {dimension_numbers = #tpu.dot_dimension_numbers<[1], [0], [0], [1], [0, 0, 1, 1], [], []>} : vector<256x128xbf16>, vector<128x128xbf16>, vector<256x128xf32> -> vector<256x128xf32>
    %c0_34 = arith.constant 0 : index
    %c0_35 = arith.constant 0 : index
    %30 = vector.load %arg8[%c0_34, %c0_35] : memref<256x128xf32, #tpu.memory_space<vmem>>, vector<256x128xf32>
    tpu.vector_store %arg8[%c0_34, %c0_35], %29 {strides = array<i32>} : memref<256x128xf32, #tpu.memory_space<vmem>>, vector<256x128xf32>,
    %c0_36 = arith.constant 0 : index
    %c0_37 = arith.constant 0 : index
    %31 = vector.load %arg8[%c0_36, %c0_37] : memref<256x128xf32, #tpu.memory_space<vmem>>, vector<256x128xf32>
    %32 = arith.truncf %31 : vector<256x128xf32> to vector<256x128xbf16>
    %c0_38 = arith.constant 0 : index
    %c0_39 = arith.constant 0 : index
    %33 = vector.load %arg5[%c0_38, %c0_39] : memref<128x128xbf16, #tpu.memory_space<vmem>>, vector<128x128xbf16>
    %cst_40 = arith.constant dense<0.000000e+00> : vector<256x128xf32>
    %34 = tpu.matmul %32, %33, %cst_40 {dimension_numbers = #tpu.dot_dimension_numbers<[1], [0], [0], [1], [0, 0, 1, 1], [], []>} : vector<256x128xbf16>, vector<128x128xbf16>, vector<256x128xf32> -> vector<256x128xf32>
    %c0_41 = arith.constant 0 : index
    %c0_42 = arith.constant 0 : index
    %35 = vector.load %arg6[%c0_41, %c0_42] : memref<1x128xf32, #tpu.memory_space<vmem>>, vector<1x128xf32>
    %36 = vector.broadcast %35 : vector<1x128xf32> to vector<256x128xf32>
    %37 = arith.addf %34, %36 : vector<256x128xf32>
    %c0_43 = arith.constant 0 : index
    %c0_44 = arith.constant 0 : index
    %38 = vector.load %arg7[%c0_43, %c0_44] : memref<256x128xf32, #tpu.memory_space<vmem>>, vector<256x128xf32>
    tpu.vector_store %arg7[%c0_43, %c0_44], %37 {strides = array<i32>} : memref<256x128xf32, #tpu.memory_space<vmem>>, vector<256x128xf32>,
    return
  }
  func.func @transform_0(%arg0: i32) -> (i32, i32) {
    %c0_i32 = arith.constant 0 : i32
    %c0_i32_0 = arith.constant 0 : i32
    return %arg0, %c0_i32 : i32, i32
  }
  func.func @transform_1(%arg0: i32) -> (i32, i32) {
    %c0_i32 = arith.constant 0 : i32
    %c0_i32_0 = arith.constant 0 : i32
    %c0_i32_1 = arith.constant 0 : i32
    return %c0_i32, %c0_i32_0 : i32, i32
  }
  func.func @transform_2(%arg0: i32) -> (i32, i32) {
    %c0_i32 = arith.constant 0 : i32
    %c0_i32_0 = arith.constant 0 : i32
    %c0_i32_1 = arith.constant 0 : i32
    return %c0_i32, %c0_i32_0 : i32, i32
  }
  func.func @transform_3(%arg0: i32) -> (i32, i32, i32) {
    %c0_i32 = arith.constant 0 : i32
    %c0_i32_0 = arith.constant 0 : i32
    %c0_i32_1 = arith.constant 0 : i32
    %c0_i32_2 = arith.constant 0 : i32
    return %c0_i32, %c0_i32_0, %c0_i32_1 : i32, i32, i32
  }
  func.func @transform_4(%arg0: i32) -> (i32, i32) {
    %c0_i32 = arith.constant 0 : i32
    %c0_i32_0 = arith.constant 0 : i32
    %c0_i32_1 = arith.constant 0 : i32
    return %c0_i32, %c0_i32_0 : i32, i32
  }
  func.func @transform_5(%arg0: i32) -> (i32, i32) {
    %c0_i32 = arith.constant 0 : i32
    %c0_i32_0 = arith.constant 0 : i32
    %c0_i32_1 = arith.constant 0 : i32
    return %c0_i32, %c0_i32_0 : i32, i32
  }
  func.func @transform_6(%arg0: i32) -> (i32, i32) {
    %c0_i32 = arith.constant 0 : i32
    %c0_i32_0 = arith.constant 0 : i32
    return %arg0, %c0_i32 : i32, i32
  }
}

module attributes {stable_mosaic.version = 11 : i64} {
  func.func @_stack_kernel_resident(%arg0: i32, %arg1: memref<256x128xbf16, #tpu.memory_space<vmem>>, %arg2: memref<128x128xbf16, #tpu.memory_space<vmem>>, %arg3: memref<1x128xf32, #tpu.memory_space<vmem>>, %arg4: memref<4x128x128xbf16, #tpu.memory_space<vmem>>, %arg5: memref<128x128xbf16, #tpu.memory_space<vmem>>, %arg6: memref<1x128xf32, #tpu.memory_space<vmem>>, %arg7: memref<256x128xf32, #tpu.memory_space<vmem>>, %arg8: memref<256x128xf32, #tpu.memory_space<vmem>>) attributes {dimension_semantics = [#tpu.dimension_semantics<parallel>], iteration_bounds = array<i64: 2>, scalar_prefetch = 0 : i64, scratch_operands = 1 : i64, tpu.core_type = #tpu.core_type<tc>, window_params = [{transform_indices = @transform_0, window_bounds = array<i64: 256, 128>}, {pipeline_mode = #tpu.pipeline_mode<synchronous>, transform_indices = @transform_1, window_bounds = array<i64: 128, 128>}, {pipeline_mode = #tpu.pipeline_mode<synchronous>, transform_indices = @transform_2, window_bounds = array<i64: 1, 128>}, {pipeline_mode = #tpu.pipeline_mode<synchronous>, transform_indices = @transform_3, window_bounds = array<i64: 4, 128, 128>}, {pipeline_mode = #tpu.pipeline_mode<synchronous>, transform_indices = @transform_4, window_bounds = array<i64: 128, 128>}, {pipeline_mode = #tpu.pipeline_mode<synchronous>, transform_indices = @transform_5, window_bounds = array<i64: 1, 128>}, {transform_indices = @transform_6, window_bounds = array<i64: 256, 128>}]} {
    %c0 = arith.constant 0 : index
    %c0_0 = arith.constant 0 : index
    %0 = vector.load %arg1[%c0, %c0_0] : memref<256x128xbf16, #tpu.memory_space<vmem>>, vector<256x128xbf16>
    %c0_1 = arith.constant 0 : index
    %c0_2 = arith.constant 0 : index
    %1 = vector.load %arg2[%c0_1, %c0_2] : memref<128x128xbf16, #tpu.memory_space<vmem>>, vector<128x128xbf16>
    %cst = arith.constant dense<0.000000e+00> : vector<256x128xf32>
    %2 = tpu.matmul %0, %1, %cst {dimension_numbers = #tpu.dot_dimension_numbers<[1], [0], [0], [1], [0, 0, 1, 1], [], []>} : vector<256x128xbf16>, vector<128x128xbf16>, vector<256x128xf32> -> vector<256x128xf32>
    %c0_3 = arith.constant 0 : index
    %c0_4 = arith.constant 0 : index
    %3 = vector.load %arg3[%c0_3, %c0_4] : memref<1x128xf32, #tpu.memory_space<vmem>>, vector<1x128xf32>
    %4 = vector.broadcast %3 : vector<1x128xf32> to vector<256x128xf32>
    %5 = arith.addf %2, %4 : vector<256x128xf32>
    %c0_5 = arith.constant 0 : index
    %c0_6 = arith.constant 0 : index
    %6 = vector.load %arg8[%c0_5, %c0_6] : memref<256x128xf32, #tpu.memory_space<vmem>>, vector<256x128xf32>
    tpu.vector_store %arg8[%c0_5, %c0_6], %5 {strides = array<i32>} : memref<256x128xf32, #tpu.memory_space<vmem>>, vector<256x128xf32>,
    %c0_7 = arith.constant 0 : index
    %c0_8 = arith.constant 0 : index
    %7 = vector.load %arg8[%c0_7, %c0_8] : memref<256x128xf32, #tpu.memory_space<vmem>>, vector<256x128xf32>
    %8 = arith.truncf %7 : vector<256x128xf32> to vector<256x128xbf16>
    %c0_9 = arith.constant 0 : index
    %c0_10 = arith.constant 0 : index
    %c0_11 = arith.constant 0 : index
    %9 = vector.load %arg4[%c0_9, %c0_10, %c0_11] : memref<4x128x128xbf16, #tpu.memory_space<vmem>>, vector<1x128x128xbf16>
    %10 = vector.shape_cast %9 : vector<1x128x128xbf16> to vector<128x128xbf16>
    %cst_12 = arith.constant dense<0.000000e+00> : vector<256x128xf32>
    %11 = tpu.matmul %8, %10, %cst_12 {dimension_numbers = #tpu.dot_dimension_numbers<[1], [0], [0], [1], [0, 0, 1, 1], [], []>} : vector<256x128xbf16>, vector<128x128xbf16>, vector<256x128xf32> -> vector<256x128xf32>
    %c0_13 = arith.constant 0 : index
    %c0_14 = arith.constant 0 : index
    %12 = vector.load %arg8[%c0_13, %c0_14] : memref<256x128xf32, #tpu.memory_space<vmem>>, vector<256x128xf32>
    tpu.vector_store %arg8[%c0_13, %c0_14], %11 {strides = array<i32>} : memref<256x128xf32, #tpu.memory_space<vmem>>, vector<256x128xf32>,
    %c0_15 = arith.constant 0 : index
    %c0_16 = arith.constant 0 : index
    %13 = vector.load %arg8[%c0_15, %c0_16] : memref<256x128xf32, #tpu.memory_space<vmem>>, vector<256x128xf32>
    %14 = arith.truncf %13 : vector<256x128xf32> to vector<256x128xbf16>
    %c1 = arith.constant 1 : index
    %c0_17 = arith.constant 0 : index
    %c0_18 = arith.constant 0 : index
    %15 = vector.load %arg4[%c1, %c0_17, %c0_18] : memref<4x128x128xbf16, #tpu.memory_space<vmem>>, vector<1x128x128xbf16>
    %16 = vector.shape_cast %15 : vector<1x128x128xbf16> to vector<128x128xbf16>
    %cst_19 = arith.constant dense<0.000000e+00> : vector<256x128xf32>
    %17 = tpu.matmul %14, %16, %cst_19 {dimension_numbers = #tpu.dot_dimension_numbers<[1], [0], [0], [1], [0, 0, 1, 1], [], []>} : vector<256x128xbf16>, vector<128x128xbf16>, vector<256x128xf32> -> vector<256x128xf32>
    %c0_20 = arith.constant 0 : index
    %c0_21 = arith.constant 0 : index
    %18 = vector.load %arg8[%c0_20, %c0_21] : memref<256x128xf32, #tpu.memory_space<vmem>>, vector<256x128xf32>
    tpu.vector_store %arg8[%c0_20, %c0_21], %17 {strides = array<i32>} : memref<256x128xf32, #tpu.memory_space<vmem>>, vector<256x128xf32>,
    %c0_22 = arith.constant 0 : index
    %c0_23 = arith.constant 0 : index
    %19 = vector.load %arg8[%c0_22, %c0_23] : memref<256x128xf32, #tpu.memory_space<vmem>>, vector<256x128xf32>
    %20 = arith.truncf %19 : vector<256x128xf32> to vector<256x128xbf16>
    %c2 = arith.constant 2 : index
    %c0_24 = arith.constant 0 : index
    %c0_25 = arith.constant 0 : index
    %21 = vector.load %arg4[%c2, %c0_24, %c0_25] : memref<4x128x128xbf16, #tpu.memory_space<vmem>>, vector<1x128x128xbf16>
    %22 = vector.shape_cast %21 : vector<1x128x128xbf16> to vector<128x128xbf16>
    %cst_26 = arith.constant dense<0.000000e+00> : vector<256x128xf32>
    %23 = tpu.matmul %20, %22, %cst_26 {dimension_numbers = #tpu.dot_dimension_numbers<[1], [0], [0], [1], [0, 0, 1, 1], [], []>} : vector<256x128xbf16>, vector<128x128xbf16>, vector<256x128xf32> -> vector<256x128xf32>
    %c0_27 = arith.constant 0 : index
    %c0_28 = arith.constant 0 : index
    %24 = vector.load %arg8[%c0_27, %c0_28] : memref<256x128xf32, #tpu.memory_space<vmem>>, vector<256x128xf32>
    tpu.vector_store %arg8[%c0_27, %c0_28], %23 {strides = array<i32>} : memref<256x128xf32, #tpu.memory_space<vmem>>, vector<256x128xf32>,
    %c0_29 = arith.constant 0 : index
    %c0_30 = arith.constant 0 : index
    %25 = vector.load %arg8[%c0_29, %c0_30] : memref<256x128xf32, #tpu.memory_space<vmem>>, vector<256x128xf32>
    %26 = arith.truncf %25 : vector<256x128xf32> to vector<256x128xbf16>
    %c3 = arith.constant 3 : index
    %c0_31 = arith.constant 0 : index
    %c0_32 = arith.constant 0 : index
    %27 = vector.load %arg4[%c3, %c0_31, %c0_32] : memref<4x128x128xbf16, #tpu.memory_space<vmem>>, vector<1x128x128xbf16>
    %28 = vector.shape_cast %27 : vector<1x128x128xbf16> to vector<128x128xbf16>
    %cst_33 = arith.constant dense<0.000000e+00> : vector<256x128xf32>
    %29 = tpu.matmul %26, %28, %cst_33 {dimension_numbers = #tpu.dot_dimension_numbers<[1], [0], [0], [1], [0, 0, 1, 1], [], []>} : vector<256x128xbf16>, vector<128x128xbf16>, vector<256x128xf32> -> vector<256x128xf32>
    %c0_34 = arith.constant 0 : index
    %c0_35 = arith.constant 0 : index
    %30 = vector.load %arg8[%c0_34, %c0_35] : memref<256x128xf32, #tpu.memory_space<vmem>>, vector<256x128xf32>
    tpu.vector_store %arg8[%c0_34, %c0_35], %29 {strides = array<i32>} : memref<256x128xf32, #tpu.memory_space<vmem>>, vector<256x128xf32>,
    %c0_36 = arith.constant 0 : index
    %c0_37 = arith.constant 0 : index
    %31 = vector.load %arg8[%c0_36, %c0_37] : memref<256x128xf32, #tpu.memory_space<vmem>>, vector<256x128xf32>
    %32 = arith.truncf %31 : vector<256x128xf32> to vector<256x128xbf16>
    %c0_38 = arith.constant 0 : index
    %c0_39 = arith.constant 0 : index
    %33 = vector.load %arg5[%c0_38, %c0_39] : memref<128x128xbf16, #tpu.memory_space<vmem>>, vector<128x128xbf16>
    %cst_40 = arith.constant dense<0.000000e+00> : vector<256x128xf32>
    %34 = tpu.matmul %32, %33, %cst_40 {dimension_numbers = #tpu.dot_dimension_numbers<[1], [0], [0], [1], [0, 0, 1, 1], [], []>} : vector<256x128xbf16>, vector<128x128xbf16>, vector<256x128xf32> -> vector<256x128xf32>
    %c0_41 = arith.constant 0 : index
    %c0_42 = arith.constant 0 : index
    %35 = vector.load %arg6[%c0_41, %c0_42] : memref<1x128xf32, #tpu.memory_space<vmem>>, vector<1x128xf32>
    %36 = vector.broadcast %35 : vector<1x128xf32> to vector<256x128xf32>
    %37 = arith.addf %34, %36 : vector<256x128xf32>
    %c0_43 = arith.constant 0 : index
    %c0_44 = arith.constant 0 : index
    %38 = vector.load %arg7[%c0_43, %c0_44] : memref<256x128xf32, #tpu.memory_space<vmem>>, vector<256x128xf32>
    tpu.vector_store %arg7[%c0_43, %c0_44], %37 {strides = array<i32>} : memref<256x128xf32, #tpu.memory_space<vmem>>, vector<256x128xf32>,
    return
  }
  func.func @transform_0(%arg0: i32) -> (i32, i32) {
    %c0_i32 = arith.constant 0 : i32
    %c0_i32_0 = arith.constant 0 : i32
    return %arg0, %c0_i32 : i32, i32
  }
  func.func @transform_1(%arg0: i32) -> (i32, i32) {
    %c0_i32 = arith.constant 0 : i32
    %c0_i32_0 = arith.constant 0 : i32
    %c0_i32_1 = arith.constant 0 : i32
    return %c0_i32, %c0_i32_0 : i32, i32
  }
  func.func @transform_2(%arg0: i32) -> (i32, i32) {
    %c0_i32 = arith.constant 0 : i32
    %c0_i32_0 = arith.constant 0 : i32
    %c0_i32_1 = arith.constant 0 : i32
    return %c0_i32, %c0_i32_0 : i32, i32
  }
  func.func @transform_3(%arg0: i32) -> (i32, i32, i32) {
    %c0_i32 = arith.constant 0 : i32
    %c0_i32_0 = arith.constant 0 : i32
    %c0_i32_1 = arith.constant 0 : i32
    %c0_i32_2 = arith.constant 0 : i32
    return %c0_i32, %c0_i32_0, %c0_i32_1 : i32, i32, i32
  }
  func.func @transform_4(%arg0: i32) -> (i32, i32) {
    %c0_i32 = arith.constant 0 : i32
    %c0_i32_0 = arith.constant 0 : i32
    %c0_i32_1 = arith.constant 0 : i32
    return %c0_i32, %c0_i32_0 : i32, i32
  }
  func.func @transform_5(%arg0: i32) -> (i32, i32) {
    %c0_i32 = arith.constant 0 : i32
    %c0_i32_0 = arith.constant 0 : i32
    %c0_i32_1 = arith.constant 0 : i32
    return %c0_i32, %c0_i32_0 : i32, i32
  }
  func.func @transform_6(%arg0: i32) -> (i32, i32) {
    %c0_i32 = arith.constant 0 : i32
    %c0_i32_0 = arith.constant 0 : i32
    return %arg0, %c0_i32 : i32, i32
  }
}

</mosaic_0001>

<bundles_post_ra>
// kernel: tpu_custom_call.1
= control target key start
LH: loop header
LB: loop body
LE: loop exit
PB: predicated region body
PF: predicated region fallthrough
CT: control target
= control target key end

     0   :  { %11 = vsyncpa [#allocation4], 0  ;;  %s2908_s0 = inlined_call_operand.hbm [shape: bf16[512,128], index: 0, kind: input, shape index: {}]   ;;  %s2909_s1 = inlined_call_operand.hbm [shape: bf16[128,128], index: 1, kind: input, shape index: {}]   ;;  %s2910_s2 = inlined_call_operand.vmem [shape: f32[1,128], index: 2, kind: input, shape index: {}]   ;;  %s2911_s3 = inlined_call_operand.hbm [shape: bf16[4,128,128], index: 3, kind: input, shape index: {}]   ;;  %s2912_s4 = inlined_call_operand.hbm [shape: bf16[128,128], index: 4, kind: input, shape index: {}]   ;;  %s2913_s5 = inlined_call_operand.vmem [shape: f32[1,128], index: 5, kind: input, shape index: {}]   ;;  %s2914_s6 = inlined_call_operand.hbm [shape: f32[512,128], index: 6, kind: output, shape index: {}]  }
   0x1   :  { %13 = vsyncpa [#allocation4 + $0x1], 0 }
   0x2   :  { %14 = vsyncpa [#allocation7], 0 }
   0x3   :  { %15 = vsyncpa [#allocation10], 0 }
   0x4   :  { %16 = vsyncpa [#allocation5], 0 }
   0x5   :  { %18 = vsyncpa [#allocation5 + $0x1], 0  ;;  %s2610_s21 = smov 0   ;;  %s2612_s22 = smov 0  }
   0x6   :  { %s2614_s23 = smov 0   ;;  %s2616_s24 = smov 0  }
   0x7 LB: > { %s2631_s25 = sadd.s32 4294967295, %s2566_s24   ;;  %s1931_s26 = sadd.s32 4294967294, %s2566_s24   ;;  %s2566_s24 = sphi %s2616_s24, %s2929_s24   ;;  %s2562_s23 = sphi %s2614_s23, %s2928_s23   ;;  %s2558_s22 = sphi %s2612_s22, %s2927_s22   ;;  %s2554_s21 = sphi %s2610_s21, %s2926_s21  }
   0x8   : > { %p44_p0 = scmp.ne.s32.totalorder %s2558_s22, %s2554_s21  ;;  %p45_p1 = scmp.eq.s32.totalorder %s2631_s25, 0 }
   0x9   : > { %p173_p2 = scmp.eq.s32.totalorder %s2631_s25, 1  ;;  %p179_p3 = scmp.eq.s32.totalorder %s1931_s26, 1 }
   0xa   : > { %p2640_p4 = por %p45_p1, %p44_p0  ;;  %p1932_p5 = scmp.ge.s32.totalorder %s2566_s24, 1 }
   0xb   : > { %p2645_p6 = por %p179_p3, %p44_p0  ;;  %p186_p7 = scmp.lt.s32.totalorder %s2566_s24, 3 }
   0xc   : > { %s197_s7 = sshll.u32 %s2909_s1, 4  ;;  %s2568_s9 = smov [#allocation6]   ;;  %s198_s7 = int_to_ptr.hbm [resolvable:$true] %s197_s7 }
   0xd   : > { %p2653_p8 = pnand %p1932_p5, %p186_p7  ;;  %s199_s10 = sshll.u32 %s2568_s9, 4  ;;  %s200_s10 = int_to_ptr.vmem [resolvable:$true] %s199_s10 }
   0xe   : > { %s214_s14 = sshll.u32 %s2911_s3, 4  ;;  %s2915_s15 = smov 64   ;;  %s215_s14 = int_to_ptr.hbm [resolvable:$true] %s214_s14 }
   0xf   : > { %p2305_p9 = pneg %p2653_p8  ;;  %s2916_s16 = smov 4  }
  0x10   : > { %s2571_s17 = smov [#allocation8]   ;;  %s228_s26 = sshll.u32 %s2912_s4, 4  ;;  %s229_s26 = int_to_ptr.hbm [resolvable:$true] %s228_s26 }
  0x11   : > { %p2661_p10 = pnand %p2305_p9, %p45_p1  ;;  %s216_s18 = sshll.u32 %s2571_s17, 4  ;;  %s217_s18 = int_to_ptr.vmem [resolvable:$true] %s216_s18 }
  0x12   : > { %s2572_s29 = smov [#allocation9]   ;;  %p38_p13 = scmp.ne.s32.totalorder %s2562_s23, %s2558_s22 }
  0x13   : > { %2308 = dma.hbm_to_vmem [thread:$0]  (!%p2661_p10), %s198_s7, 1024, %s200_s10, [#allocation7], %s2915_s15, %s2915_s15, %s2916_s16  }
  0x14   : > { %2311 = dma.hbm_to_vmem [thread:$0]  (!%p2661_p10), %s215_s14, 4096, %s217_s18, [#allocation7], %s2915_s15, %s2915_s15, %s2916_s16  }
  0x15   : > { %s230_s30 = sshll.u32 %s2572_s29, 4  ;;  %s2683_s7 = sadd.s32 1, %s2566_s24   ;;  %s231_s30 = int_to_ptr.vmem [resolvable:$true] %s230_s30 }
  0x16   : > { %2314 = dma.hbm_to_vmem [thread:$0]  (!%p2661_p10), %s229_s26, 1024, %s231_s30, [#allocation10], %s2915_s15, %s2915_s15, %s2916_s16  }
  0x17   : > { %s28_s9 = ssub.s32 %s2566_s24, %s2683_s7  ;;  %s31_s10 = sadd.s32 1, %s2562_s23 }
  0x18   : > { %p29_p12 = scmp.eq.s32.totalorder %s28_s9, 0  ;;  %p39_p0 = scmp.eq.s32.totalorder %s2566_s24, 0 }
  0x19   : > { %p2701_p3 = por %p173_p2, %p38_p13  ;;  %p2326_p5 = scmp.lt.s32.totalorder %s2566_s24, 2 }
  0x1a   : > { %s2697_s12 = scalar_select %p29_p12, %s2562_s23, %s31_s10  }
  0x1b   : > { %s247_s14 = sand.u32 1, %s2562_s23   ;;  %s2207_s11 = sshll.u32 %s2566_s24, 7 }
  0x1c   : > { %p40_p7 = por %p39_p0, %p38_p13  ;;  %s1937_s17 = sshll.u32 %s247_s14, 7 }
  0x1d   : > { %s256_s20 = scalar_lea.hbm %s2908_s0, %s2207_s11  ;;  %s251_s29 = scalar_lea.vmem [#allocation3], %s1937_s17 }
  0x1e   : > { %s257_s26 = sshll.u32 %s256_s20, 4  ;;  %s259_s30 = sshll.u32 %s251_s29, 4  ;;  %s258_s26 = int_to_ptr.hbm [resolvable:$true] %s257_s26  ;;  %s260_s30 = int_to_ptr.vmem [resolvable:$true] %s259_s30 }
  0x1f   : > { %p2711_p9 = pnand %p2326_p5, %p40_p7  ;;  %s248_s10 = scalar_lea.sflag [#allocation4], %s247_s14 }
  0x20   : > { %s2462_s15 = sshra.s32 %s258_s26, 4  ;;  %s2469_s17 = scalar_lea.hbm %s2908_s0, 256  ;;  %s2463_s15 = int_to_ptr.hbm [resolvable:$true] %s2462_s15 }
  0x21   : > { %s2464_s16 = scalar_lea.hbm %s2463_s15, 128  ;;  %p2466_p10 = pneg %p2711_p9 }
  0x22   : > { %p2465_p2 = scmp.ne.s32.totalorder %s2463_s15, %s2464_s16  ;;  %p2470_p0 = scmp.lt.s32.totalorder %s2463_s15, %s2908_s0 }
  0x23   : > { %p2471_p5 = scmp.lt.s32.totalorder %s2469_s17, %s2464_s16 }
  0x24   : > { %p2467_p12 = pnand %p2466_p10, %p2465_p2 }
  0x25   : > { %p2472_p7 = por %p2471_p5, %p2470_p0 }
  0x26   : > { %p2468_p13 = pneg %p2467_p12 }
  0x28   : > { %p2473_p11 = pnand %p2472_p7, %p2468_p13 }
  0x2a   : > { %2476 = shalt.err (!%p2473_p11)
}
  0x2b   : > { %s2923_s14 = smov 4   ;;  %s2924_s29 = smov 64  }
  0x2c   : > { %2318 = dma.hbm_to_vmem [thread:$0]  (!%p2711_p9), %s258_s26, 2048, %s260_s30, %s248_s10, %s2924_s29, %s2924_s29, %s2923_s14  }
  0x2d   : > { %271 = sbr.rel (%p2653_p8) target bundleno = 1161 (0x489), region = 44  ;;  %s2731_s11 = sand.u32 (!%p2653_p8), 1, %s2558_s22  }
  0x2e   : > { %s1941_s15 = sshll.u32 (!%p2653_p8), %s2731_s11, 7  ;;  %s274_s16 = scalar_lea.sflag (!%p2653_p8), [#allocation4], %s2731_s11 }
  0x2f   : > { %s2735_s18 = scalar_lea.vmem (!%p2653_p8), [#allocation3], %s1941_s15 }
  0x32   : > { %2537 = dma.done.wait (%p2640_p4), %s274_s16, 2048  }
  0x33   : > { %2539 = vsyncadd (%p2640_p4), %s274_s16, 4294965248 }
  0x34   : > { %2541 = dma.done.wait (%p45_p1), [#allocation7], 5120  }
  0x35   : > { %2543 = vsyncadd (%p45_p1), [#allocation7], 4294962176 }
  0x36   : > { %2545 = dma.done.wait (%p45_p1), [#allocation10], 1024  }
  0x37   : > { %2547 = vsyncadd (%p45_p1), [#allocation10], 4294966272  ;;  %v2231_v0 = vld [vmem:[#allocation6 + $0x38] sm:$0xff]  ;;  %v2230_v1 = vld [vmem:[#allocation6 + $0x30] sm:$0xff]  ;;  %s1945_s26 = sshll.u32 %s2731_s11, 8  ;;  %s2272_s17 = sshll.u32 %s2631_s25, 8 }
  0x38   : > { %520 = vmatpush.bf16.msra.mxu0 %v2231_v0  ;;  %2273 = vmatpush.bf16.msra.mxu2 %v2231_v0  ;;  %v2229_v2 = vld [vmem:[#allocation6 + $0x28] sm:$0xff]  ;;  %v2228_v3 = vld [vmem:[#allocation6 + $0x20] sm:$0xff]  ;;  %v2227_v4 = vld [vmem:[#allocation6 + $0x18] sm:$0xff]  ;;  %s2809_s10 = scalar_lea.vmem [#allocation11], %s1945_s26  ;;  %s1825_s14 = scalar_lea.hbm %s2914_s6, %s2272_s17 }
  0x39   : > { %v2226_v5 = vld [vmem:[#allocation6 + $0x10] sm:$0xff]  ;;  %v2225_v6 = vld [vmem:[#allocation6 + $0x8] sm:$0xff]  ;;  %v2224_v7 = vld [vmem:[#allocation6] sm:$0xff]  ;;  %s1826_s29 = sshll.u32 %s2809_s10, 4  ;;  %s1828_s15 = sshll.u32 %s1825_s14, 4  ;;  %s1827_s29 = int_to_ptr.vmem [resolvable:$true] %s1826_s29  ;;  %s1829_s15 = int_to_ptr.hbm [resolvable:$true] %s1828_s15 }
  0x3a   : > { %v2208_v8 = vld [vmem:[%s2735_s18] sm:$0xff]  ;;  %v2209_v9 = vld [vmem:[%s2735_s18 + $0x8] sm:$0xff]  ;;  %v2210_v10 = vld [vmem:[%s2735_s18 + $0x10] sm:$0xff]  ;;  %s1814_s16 = scalar_lea.sflag [#allocation5], %s2731_s11  ;;  %s2512_s26 = scalar_lea.hbm %s2914_s6, 512 }
  0x3b   : > { %v2211_v11 = vld [vmem:[%s2735_s18 + $0x18] sm:$0xff]  ;;  %v2212_v12 = vld [vmem:[%s2735_s18 + $0x20] sm:$0xff]  ;;  %v2238_v15 = vld [vmem:[#allocation8 + $0x30] sm:$0xff] }
  0x3c   : > { %521 = vmatpush.bf16.msra.mxu0 %v2230_v1  ;;  %2274 = vmatpush.bf16.msra.mxu2 %v2230_v1  ;;  %v2216_v13 = vld [vmem:[%s2735_s18 + $0x40] sm:$0xff]  ;;  %v2239_v14 = vld [vmem:[#allocation8 + $0x38] sm:$0xff]  ;;  %v2213_v16 = vld [vmem:[%s2735_s18 + $0x28] sm:$0xff] }
  0x3d   : > { %753 = vmatpush.bf16.msra.mxu1 %v2239_v14  ;;  %2281 = vmatpush.bf16.msra.mxu3 %v2239_v14  ;;  %v2237_v17 = vld [vmem:[#allocation8 + $0x28] sm:$0xff]  ;;  %v2236_v19 = vld [vmem:[#allocation8 + $0x20] sm:$0xff]  ;;  %v2235_v20 = vld [vmem:[#allocation8 + $0x18] sm:$0xff] }
  0x3e   : > { %v2217_v18 = vld [vmem:[%s2735_s18 + $0x48] sm:$0xff]  ;;  %v2214_v21 = vld [vmem:[%s2735_s18 + $0x30] sm:$0xff]  ;;  %v2232_v25 = vld [vmem:[#allocation8] sm:$0xff] }
  0x3f   : > { %v2234_v22 = vld [vmem:[#allocation8 + $0x10] sm:$0xff]  ;;  %v2233_v24 = vld [vmem:[#allocation8 + $0x8] sm:$0xff]  ;;  %v2215_v26 = vld [vmem:[%s2735_s18 + $0x38] sm:$0xff] }
  0x40   : > { %522 = vmatpush.bf16.msra.mxu0 %v2229_v2  ;;  %2275 = vmatpush.bf16.msra.mxu2 %v2229_v2  ;;  %v2218_v23 = vld [vmem:[%s2735_s18 + $0x50] sm:$0xff]  ;;  %v2247_v27 = vld [vmem:[#allocation8 + $0x78] sm:$0xff]  ;;  %v2220_v31 = vld [vmem:[%s2735_s18 + $0x60] sm:$0xff] }
  0x41   : > { %754 = vmatpush.bf16.msra.mxu1 %v2238_v15  ;;  %2282 = vmatpush.bf16.msra.mxu3 %v2238_v15  ;;  %v2219_v28 = vld [vmem:[%s2735_s18 + $0x58] sm:$0xff]  ;;  %v2246_v30 = vld [vmem:[#allocation8 + $0x70] sm:$0xff]  ;;  %v2765_v32 = vld [vmem:[%s2910_s2] ss:$0 sm:$0xff] }
  0x42   : > { %v2245_v38 = vld [vmem:[#allocation8 + $0x68] sm:$0xff]  ;;  %v2244_v45 = vld [vmem:[#allocation8 + $0x60] sm:$0xff]  ;;  %v2222_v46 = vld [vmem:[%s2735_s18 + $0x70] sm:$0xff] }
  0x43   : > { %v2221_v39 = vld [vmem:[%s2735_s18 + $0x68] sm:$0xff]  ;;  %v2243_v52 = vld [vmem:[#allocation8 + $0x58] sm:$0xff]  ;;  %v2242_v59 = vld [vmem:[#allocation8 + $0x50] sm:$0xff] }
  0x44   : > { %523 = vmatpush.bf16.msra.mxu0 %v2228_v3  ;;  %2276 = vmatpush.bf16.msra.mxu2 %v2228_v3  ;;  %v2223_v53 = vld [vmem:[%s2735_s18 + $0x78] sm:$0xff]  ;;  %s2506_s18 = sshra.s32 %s1829_s15, 4  ;;  %s2507_s18 = int_to_ptr.hbm [resolvable:$true] %s2506_s18 }
  0x45   : > { %755 = vmatpush.bf16.msra.mxu1 %v2237_v17  ;;  %2283 = vmatpush.bf16.msra.mxu3 %v2237_v17  ;;  %s2508_s25 = scalar_lea.hbm %s2507_s18, 256  ;;  %p2513_p11 = scmp.lt.s32.totalorder %s2507_s18, %s2914_s6 }
  0x46   : > { %p2509_p1 = scmp.ne.s32.totalorder %s2507_s18, %s2508_s25  ;;  %p2514_p9 = scmp.lt.s32.totalorder %s2512_s26, %s2508_s25 }
  0x48   : > { %524 = vmatpush.bf16.msra.mxu0 %v2227_v4  ;;  %2277 = vmatpush.bf16.msra.mxu2 %v2227_v4  ;;  %v2241_v4 = vld [vmem:[#allocation8 + $0x48] sm:$0xff]  ;;  %p2510_p4 = pnand %p2509_p1, %p2701_p3  ;;  %p2515_p2 = por %p2514_p9, %p2513_p11 }
  0x49   : > { %756 = vmatpush.bf16.msra.mxu1 %v2236_v19  ;;  %2284 = vmatpush.bf16.msra.mxu3 %v2236_v19 }
  0x4a   : > { %p2511_p8 = pneg %p2510_p4 }
  0x4c   : > { %525 = vmatpush.bf16.msra.mxu0 %v2226_v5  ;;  %2278 = vmatpush.bf16.msra.mxu2 %v2226_v5  ;;  %p2516_p10 = pnand %p2515_p2, %p2511_p8 }
  0x4d   : > { %757 = vmatpush.bf16.msra.mxu1 %v2235_v20  ;;  %2285 = vmatpush.bf16.msra.mxu3 %v2235_v20 }
  0x50   : > { %526 = vmatpush.bf16.msra.mxu0 %v2225_v6  ;;  %2279 = vmatpush.bf16.msra.mxu2 %v2225_v6 }
  0x51   : > { %758 = vmatpush.bf16.msra.mxu1 %v2234_v22  ;;  %2286 = vmatpush.bf16.msra.mxu3 %v2234_v22 }
  0x54   : > { %527 = vmatpush.bf16.msra.mxu0 %v2224_v7  ;;  %2280 = vmatpush.bf16.msra.mxu2 %v2224_v7 }
  0x55   : > { %759 = vmatpush.bf16.msra.mxu1 %v2233_v24  ;;  %2287 = vmatpush.bf16.msra.mxu3 %v2233_v24 }
  0x57   : > { %528 = vmatmul.bf16.vlgmr.msra.gmra.mxu0 %v2208_v8  ;;  %568 = vmatmul.bf16.vlgmr.msra.gmra.mxu2 %v2216_v13 }
  0x58   : > { %987 = vmatpush.bf16.msrb.mxu2 %v2247_v27 }
  0x59   : > { %760 = vmatpush.bf16.msra.mxu1 %v2232_v25  ;;  %2288 = vmatpush.bf16.msra.mxu3 %v2232_v25 }
  0x5c   : > { %988 = vmatpush.bf16.msrb.mxu2 %v2246_v30 }
  0x60   : > { %989 = vmatpush.bf16.msrb.mxu2 %v2245_v38 }
  0x64   : > { %990 = vmatpush.bf16.msrb.mxu2 %v2244_v45  ;;  %v2254_v45 = vld [vmem:[#allocation8 + $0xb0] sm:$0xff] }
  0x67   : > { %533 = vmatmul.bf16.gmra.mxu0 %v2209_v9  ;;  %573 = vmatmul.bf16.gmra.mxu2 %v2217_v18 }
  0x68   : > { %991 = vmatpush.bf16.msrb.mxu2 %v2243_v52 }
  0x6c   : > { %992 = vmatpush.bf16.msrb.mxu2 %v2242_v59 }
  0x70   : > { %993 = vmatpush.bf16.msrb.mxu2 %v2241_v4 }
  0x77   : > { %538 = vmatmul.bf16.gmra.mxu0 %v2210_v10  ;;  %578 = vmatmul.bf16.gmra.mxu2 %v2218_v23 }
  0x87   : > { %543 = vmatmul.bf16.gmra.mxu0 %v2211_v11  ;;  %583 = vmatmul.bf16.gmra.mxu2 %v2219_v28 }
  0x97   : > { %548 = vmatmul.bf16.gmra.mxu0 %v2212_v12  ;;  %588 = vmatmul.bf16.gmra.mxu2 %v2220_v31  ;;  %v2240_v12 = vld [vmem:[#allocation8 + $0x40] sm:$0xff] }
  0x98   : > { %994 = vmatpush.bf16.msrb.mxu2 %v2240_v12 }
  0xa7   : > { %553 = vmatmul.bf16.gmra.mxu0 %v2213_v16  ;;  %593 = vmatmul.bf16.gmra.mxu2 %v2221_v39 }
  0xb7   : > { %558 = vmatmul.bf16.gmra.mxu0 %v2214_v21  ;;  %598 = vmatmul.bf16.gmra.mxu2 %v2222_v46 }
  0xc7   : > { %563 = vmatmul.bf16.gmra.mxu0 %v2215_v26  ;;  %603 = vmatmul.bf16.gmra.mxu2 %v2223_v53 }
  0xd4   : > { %v529_v29 = vpop.f32.mrf.mxu0 }
  0xd5   : > { %v530_v34 = vadd.f32 %v2765_v32, %v529_v29 }
  0xda   : > { %v569_v63 = vpop.f32.mrf.mxu2 }
  0xdb   : > { %v570_v2 = vadd.f32 %v2765_v32, %v569_v63 }
  0xdc   : > { %v531_v33 = vpop.f32.mrf.mxu0 }
  0xdd   : > { %v532_v35 = vadd.f32 %v2765_v32, %v531_v33 }
  0xdf   : > { %v673_v36 = vpack.c.bf16 %v532_v35, %v530_v34 }
  0xe1   : > { %761 = vmatmul.bf16.vlgmr.msra.gmra.mxu1 %v673_v36 }
  0xe2   : > { %v571_v3 = vpop.f32.mrf.mxu2 }
  0xe3   : > { %v572_v5 = vadd.f32 %v2765_v32, %v571_v3 }
  0xe4   : > { %v534_v37 = vpop.f32.mrf.mxu0 }
  0xe5   : > { %v535_v41 = vadd.f32 %v2765_v32, %v534_v37  ;;  %v681_v6 = vpack.c.bf16 %v572_v5, %v570_v2  ;;  %v2255_v37 = vld [vmem:[#allocation8 + $0xb8] sm:$0xff] }
  0xe6   : > { %1221 = vmatpush.bf16.msrb.mxu3 %v2255_v37 }
  0xe7   : > { %801 = vmatmul.bf16.vlgmr.msra.gmra.mxu3 %v681_v6 }
  0xea   : > { %v574_v10 = vpop.f32.mrf.mxu2  ;;  %1222 = vmatpush.bf16.msrb.mxu3 %v2254_v45 }
  0xeb   : > { %v575_v14 = vadd.f32 %v2765_v32, %v574_v10 }
  0xec   : > { %v536_v40 = vpop.f32.mrf.mxu0 }
  0xed   : > { %v537_v42 = vadd.f32 %v2765_v32, %v536_v40 }
  0xef   : > { %v674_v43 = vpack.c.bf16 %v537_v42, %v535_v41 }
  0xf1   : > { %766 = vmatmul.bf16.gmra.mxu1 %v674_v43 }
  0xf2   : > { %v576_v15 = vpop.f32.mrf.mxu2 }
  0xf3   : > { %v577_v16 = vadd.f32 %v2765_v32, %v576_v15 }
  0xf4   : > { %v539_v44 = vpop.f32.mrf.mxu0 }
  0xf5   : > { %v540_v48 = vadd.f32 %v2765_v32, %v539_v44  ;;  %v682_v17 = vpack.c.bf16 %v577_v16, %v575_v14  ;;  %v2250_v14 = vld [vmem:[#allocation8 + $0x90] sm:$0xff] }
  0xf7   : > { %806 = vmatmul.bf16.gmra.mxu3 %v682_v17 }
  0xfa   : > { %v579_v21 = vpop.f32.mrf.mxu2 }
  0xfb   : > { %v580_v24 = vadd.f32 %v2765_v32, %v579_v21 }
  0xfc   : > { %v541_v47 = vpop.f32.mrf.mxu0 }
  0xfd   : > { %v542_v49 = vadd.f32 %v2765_v32, %v541_v47 }
  0xff   : > { %v675_v50 = vpack.c.bf16 %v542_v49, %v540_v48 }
 0x101   : > { %771 = vmatmul.bf16.gmra.mxu1 %v675_v50 }
 0x102   : > { %v581_v25 = vpop.f32.mrf.mxu2 }
 0x103   : > { %v582_v26 = vadd.f32 %v2765_v32, %v581_v25 }
 0x104   : > { %v544_v51 = vpop.f32.mrf.mxu0 }
 0x105   : > { %v545_v55 = vadd.f32 %v2765_v32, %v544_v51  ;;  %v683_v27 = vpack.c.bf16 %v582_v26, %v580_v24 }
 0x107   : > { %811 = vmatmul.bf16.gmra.mxu3 %v683_v27 }
 0x10a   : > { %v584_v31 = vpop.f32.mrf.mxu2 }
 0x10b   : > { %v585_v34 = vadd.f32 %v2765_v32, %v584_v31 }
 0x10c   : > { %v546_v54 = vpop.f32.mrf.mxu0 }
 0x10d   : > { %v547_v56 = vadd.f32 %v2765_v32, %v546_v54  ;;  %v2253_v54 = vld [vmem:[#allocation8 + $0xa8] sm:$0xff] }
 0x10e   : > { %1223 = vmatpush.bf16.msrb.mxu3 %v2253_v54 }
 0x10f   : > { %v676_v57 = vpack.c.bf16 %v547_v56, %v545_v55 }
 0x111   : > { %776 = vmatmul.bf16.gmra.mxu1 %v676_v57 }
 0x112   : > { %v586_v35 = vpop.f32.mrf.mxu2 }
 0x113   : > { %v587_v36 = vadd.f32 %v2765_v32, %v586_v35 }
 0x114   : > { %v549_v58 = vpop.f32.mrf.mxu0 }
 0x115   : > { %v550_v61 = vadd.f32 %v2765_v32, %v549_v58  ;;  %v684_v38 = vpack.c.bf16 %v587_v36, %v585_v34  ;;  %v2262_v36 = vld [vmem:[#allocation8 + $0xf0] sm:$0xff] }
 0x117   : > { %816 = vmatmul.bf16.gmra.mxu3 %v684_v38 }
 0x11a   : > { %v589_v39 = vpop.f32.mrf.mxu2 }
 0x11b   : > { %v590_v41 = vadd.f32 %v2765_v32, %v589_v39 }
 0x11c   : > { %v551_v60 = vpop.f32.mrf.mxu0 }
 0x11d   : > { %v552_v62 = vadd.f32 %v2765_v32, %v551_v60 }
 0x11f   : > { %v677_v0 = vpack.c.bf16 %v552_v62, %v550_v61 }
 0x121   : > { %781 = vmatmul.bf16.gmra.mxu1 %v677_v0  ;;  %v2252_v0 = vld [vmem:[#allocation8 + $0xa0] sm:$0xff] }
 0x122   : > { %v591_v42 = vpop.f32.mrf.mxu2  ;;  %1224 = vmatpush.bf16.msrb.mxu3 %v2252_v0 }
 0x123   : > { %v592_v44 = vadd.f32 %v2765_v32, %v591_v42 }
 0x124   : > { %v554_v1 = vpop.f32.mrf.mxu0 }
 0x125   : > { %v555_v8 = vadd.f32 %v2765_v32, %v554_v1  ;;  %v685_v47 = vpack.c.bf16 %v592_v44, %v590_v41 }
 0x127   : > { %821 = vmatmul.bf16.gmra.mxu3 %v685_v47 }
 0x12a   : > { %v594_v48 = vpop.f32.mrf.mxu2 }
 0x12b   : > { %v595_v50 = vadd.f32 %v2765_v32, %v594_v48 }
 0x12c   : > { %v556_v7 = vpop.f32.mrf.mxu0 }
 0x12d   : > { %v557_v9 = vadd.f32 %v2765_v32, %v556_v7 }
 0x12f   : > { %v678_v11 = vpack.c.bf16 %v557_v9, %v555_v8  ;;  %v2251_v9 = vld [vmem:[#allocation8 + $0x98] sm:$0xff] }
 0x130   : > { %1225 = vmatpush.bf16.msrb.mxu3 %v2251_v9 }
 0x131   : > { %786 = vmatmul.bf16.gmra.mxu1 %v678_v11 }
 0x132   : > { %v596_v51 = vpop.f32.mrf.mxu2 }
 0x133   : > { %v597_v53 = vadd.f32 %v2765_v32, %v596_v51 }
 0x134   : > { %v559_v13 = vpop.f32.mrf.mxu0  ;;  %1226 = vmatpush.bf16.msrb.mxu3 %v2250_v14 }
 0x135   : > { %v560_v19 = vadd.f32 %v2765_v32, %v559_v13  ;;  %v686_v56 = vpack.c.bf16 %v597_v53, %v595_v50  ;;  %v2260_v50 = vld [vmem:[#allocation8 + $0xe0] sm:$0xff] }
 0x137   : > { %826 = vmatmul.bf16.gmra.mxu3 %v686_v56 }
 0x13a   : > { %v599_v57 = vpop.f32.mrf.mxu2 }
 0x13b   : > { %v600_v59 = vadd.f32 %v2765_v32, %v599_v57  ;;  %v2259_v57 = vld [vmem:[#allocation8 + $0xd8] sm:$0xff] }
 0x13c   : > { %v561_v18 = vpop.f32.mrf.mxu0 }
 0x13d   : > { %v562_v20 = vadd.f32 %v2765_v32, %v561_v18  ;;  %v2249_v18 = vld [vmem:[#allocation8 + $0x88] sm:$0xff] }
 0x13e   : > { %1227 = vmatpush.bf16.msrb.mxu3 %v2249_v18 }
 0x13f   : > { %v679_v22 = vpack.c.bf16 %v562_v20, %v560_v19  ;;  %v2248_v19 = vld [vmem:[#allocation8 + $0x80] sm:$0xff] }
 0x141   : > { %791 = vmatmul.bf16.gmra.mxu1 %v679_v22 }
 0x142   : > { %v601_v60 = vpop.f32.mrf.mxu2  ;;  %1228 = vmatpush.bf16.msrb.mxu3 %v2248_v19  ;;  %v2271_v19 = vld [vmem:[#allocation9 + $0x38] sm:$0xff] }
 0x143   : > { %v602_v62 = vadd.f32 %v2765_v32, %v601_v60  ;;  %1692 = vmatpush.bf16.msrb.mxu1 %v2271_v19 }
 0x144   : > { %v564_v23 = vpop.f32.mrf.mxu0 }
 0x145   : > { %v565_v29 = vadd.f32 %v2765_v32, %v564_v23  ;;  %v687_v1 = vpack.c.bf16 %v602_v62, %v600_v59 }
 0x147   : > { %831 = vmatmul.bf16.gmra.mxu3 %v687_v1 }
 0x14a   : > { %v604_v2 = vpop.f32.mrf.mxu2 }
 0x14b   : > { %v605_v4 = vadd.f32 %v2765_v32, %v604_v2 }
 0x14c   : > { %v566_v28 = vpop.f32.mrf.mxu0 }
 0x14d   : > { %v567_v30 = vadd.f32 %v2765_v32, %v566_v28 }
 0x14f   : > { %v680_v33 = vpack.c.bf16 %v567_v30, %v565_v29  ;;  %v2263_v29 = vld [vmem:[#allocation8 + $0xf8] sm:$0xff] }
 0x150   : > { %1455 = vmatpush.bf16.msrb.mxu0 %v2263_v29 }
 0x151   : > { %796 = vmatmul.bf16.gmra.mxu1 %v680_v33 }
 0x152   : > { %v606_v5 = vpop.f32.mrf.mxu2 }
 0x153   : > { %v607_v7 = vadd.f32 %v2765_v32, %v606_v5 }
 0x154   : > { %1456 = vmatpush.bf16.msrb.mxu0 %v2262_v36 }
 0x155   : > { %v688_v10 = vpack.c.bf16 %v607_v7, %v605_v4 }
 0x157   : > { %836 = vmatmul.bf16.gmra.mxu3 %v688_v10 }
 0x15e   : > { %v762_v40 = vpop.f32.mrf.mxu1 }
 0x166   : > { %v764_v43 = vpop.f32.mrf.mxu1 }
 0x167   : > { %v906_v46 = vpack.c.bf16 %v764_v43, %v762_v40  ;;  %v2261_v43 = vld [vmem:[#allocation8 + $0xe8] sm:$0xff] }
 0x168   : > { %1457 = vmatpush.bf16.msrb.mxu0 %v2261_v43 }
 0x169   : > { %995 = vmatmul.bf16.vlgmr.msrb.gmra.mxu2 %v906_v46 }
 0x16a   : > { %v802_v20 = vpop.f32.mrf.mxu3 }
 0x16c   : > { %1458 = vmatpush.bf16.msrb.mxu0 %v2260_v50 }
 0x16e   : > { %v767_v49 = vpop.f32.mrf.mxu1 }
 0x170   : > { %1459 = vmatpush.bf16.msrb.mxu0 %v2259_v57 }
 0x172   : > { %v804_v23 = vpop.f32.mrf.mxu3 }
 0x173   : > { %v914_v31 = vpack.c.bf16 %v804_v23, %v802_v20  ;;  %v2270_v23 = vld [vmem:[#allocation9 + $0x30] sm:$0xff] }
 0x174   : > { %1693 = vmatpush.bf16.msrb.mxu1 %v2270_v23 }
 0x176   : > { %v769_v52 = vpop.f32.mrf.mxu1 }
 0x177   : > { %v907_v55 = vpack.c.bf16 %v769_v52, %v767_v49 }
 0x179   : > { %1000 = vmatmul.bf16.gmra.mxu2 %v907_v55 }
 0x17a   : > { %v807_v25 = vpop.f32.mrf.mxu3 }
 0x17e   : > { %v772_v58 = vpop.f32.mrf.mxu1 }
 0x182   : > { %v809_v28 = vpop.f32.mrf.mxu3 }
 0x183   : > { %v915_v38 = vpack.c.bf16 %v809_v28, %v807_v25 }
 0x186   : > { %v774_v61 = vpop.f32.mrf.mxu1 }
 0x187   : > { %v908_v63 = vpack.c.bf16 %v774_v61, %v772_v58 }
 0x189   : > { %1005 = vmatmul.bf16.gmra.mxu2 %v908_v63  ;;  %v2258_v63 = vld [vmem:[#allocation8 + $0xd0] sm:$0xff] }
 0x18a   : > { %v812_v30 = vpop.f32.mrf.mxu3  ;;  %1460 = vmatpush.bf16.msrb.mxu0 %v2258_v63 }
 0x18e   : > { %v777_v3 = vpop.f32.mrf.mxu1 }
 0x192   : > { %v814_v34 = vpop.f32.mrf.mxu3 }
 0x193   : > { %v916_v45 = vpack.c.bf16 %v814_v34, %v812_v30  ;;  %v2269_v30 = vld [vmem:[#allocation9 + $0x28] sm:$0xff] }
 0x194   : > { %1694 = vmatpush.bf16.msrb.mxu1 %v2269_v30 }
 0x196   : > { %v779_v6 = vpop.f32.mrf.mxu1 }
 0x197   : > { %v909_v8 = vpack.c.bf16 %v779_v6, %v777_v3  ;;  %v2257_v6 = vld [vmem:[#allocation8 + $0xc8] sm:$0xff] }
 0x198   : > { %1461 = vmatpush.bf16.msrb.mxu0 %v2257_v6 }
 0x199   : > { %1010 = vmatmul.bf16.gmra.mxu2 %v909_v8 }
 0x19a   : > { %v817_v39 = vpop.f32.mrf.mxu3 }
 0x19e   : > { %v782_v11 = vpop.f32.mrf.mxu1 }
 0x1a2   : > { %v819_v42 = vpop.f32.mrf.mxu3 }
 0x1a3   : > { %v917_v51 = vpack.c.bf16 %v819_v42, %v817_v39 }
 0x1a6   : > { %v784_v12 = vpop.f32.mrf.mxu1 }
 0x1a7   : > { %v910_v13 = vpack.c.bf16 %v784_v12, %v782_v11 }
 0x1a9   : > { %1015 = vmatmul.bf16.gmra.mxu2 %v910_v13  ;;  %v2256_v13 = vld [vmem:[#allocation8 + $0xc0] sm:$0xff] }
 0x1aa   : > { %v822_v47 = vpop.f32.mrf.mxu3  ;;  %1462 = vmatpush.bf16.msrb.mxu0 %v2256_v13 }
 0x1ae   : > { %v787_v15 = vpop.f32.mrf.mxu1 }
 0x1b2   : > { %v824_v52 = vpop.f32.mrf.mxu3 }
 0x1b3   : > { %v918_v58 = vpack.c.bf16 %v824_v52, %v822_v47  ;;  %v2266_v52 = vld [vmem:[#allocation9 + $0x10] sm:$0xff] }
 0x1b6   : > { %v789_v16 = vpop.f32.mrf.mxu1 }
 0x1b7   : > { %v911_v17 = vpack.c.bf16 %v789_v16, %v787_v15 }
 0x1b9   : > { %1020 = vmatmul.bf16.gmra.mxu2 %v911_v17 }
 0x1ba   : > { %v827_v54 = vpop.f32.mrf.mxu3 }
 0x1be   : > { %v792_v32 = vpop.f32.mrf.mxu1 }
 0x1c2   : > { %v829_v59 = vpop.f32.mrf.mxu3 }
 0x1c3   : > { %v919_v1 = vpack.c.bf16 %v829_v59, %v827_v54 }
 0x1c6   : > { %v794_v21 = vpop.f32.mrf.mxu1 }
 0x1c7   : > { %v912_v22 = vpack.c.bf16 %v794_v21, %v792_v32 }
 0x1c9   : > { %1025 = vmatmul.bf16.gmra.mxu2 %v912_v22 }
 0x1ca   : > { %v832_v0 = vpop.f32.mrf.mxu3 }
 0x1ce   : > { %v797_v24 = vpop.f32.mrf.mxu1 }
 0x1d2   : > { %v834_v3 = vpop.f32.mrf.mxu3 }
 0x1d3   : > { %v920_v7 = vpack.c.bf16 %v834_v3, %v832_v0 }
 0x1d6   : > { %v799_v26 = vpop.f32.mrf.mxu1 }
 0x1d7   : > { %v913_v27 = vpack.c.bf16 %v799_v26, %v797_v24 }
 0x1d9   : > { %1030 = vmatmul.bf16.gmra.mxu2 %v913_v27 }
 0x1da   : > { %v837_v8 = vpop.f32.mrf.mxu3 }
 0x1e2   : > { %v839_v10 = vpop.f32.mrf.mxu3 }
 0x1e3   : > { %v921_v14 = vpack.c.bf16 %v839_v10, %v837_v8 }
 0x1e9   : > { %1035 = vmatmul.bf16.gmra.mxu2 %v914_v31 }
 0x1ec   : > { %v996_v33 = vpop.f32.mrf.mxu2 }
 0x1f4   : > { %v998_v35 = vpop.f32.mrf.mxu2 }
 0x1f5   : > { %v1140_v37 = vpack.c.bf16 %v998_v35, %v996_v33 }
 0x1f7   : > { %1229 = vmatmul.bf16.vlgmr.msrb.gmra.mxu3 %v1140_v37 }
 0x1f9   : > { %1040 = vmatmul.bf16.gmra.mxu2 %v915_v38  ;;  %v2268_v38 = vld [vmem:[#allocation9 + $0x20] sm:$0xff] }
 0x1fa   : > { %1695 = vmatpush.bf16.msrb.mxu1 %v2268_v38 }
 0x1fc   : > { %v1001_v40 = vpop.f32.mrf.mxu2 }
 0x204   : > { %v1003_v41 = vpop.f32.mrf.mxu2 }
 0x205   : > { %v1141_v44 = vpack.c.bf16 %v1003_v41, %v1001_v40 }
 0x207   : > { %1234 = vmatmul.bf16.gmra.mxu3 %v1141_v44 }
 0x209   : > { %1045 = vmatmul.bf16.gmra.mxu2 %v916_v45  ;;  %v2267_v45 = vld [vmem:[#allocation9 + $0x18] sm:$0xff] }
 0x20a   : > { %1696 = vmatpush.bf16.msrb.mxu1 %v2267_v45 }
 0x20c   : > { %v1006_v46 = vpop.f32.mrf.mxu2 }
 0x20e   : > { %1697 = vmatpush.bf16.msrb.mxu1 %v2266_v52 }
 0x214   : > { %v1008_v48 = vpop.f32.mrf.mxu2 }
 0x215   : > { %v1142_v49 = vpack.c.bf16 %v1008_v48, %v1006_v46 }
 0x217   : > { %1239 = vmatmul.bf16.gmra.mxu3 %v1142_v49 }
 0x219   : > { %1050 = vmatmul.bf16.gmra.mxu2 %v917_v51 }
 0x21c   : > { %v1011_v53 = vpop.f32.mrf.mxu2 }
 0x224   : > { %v1013_v55 = vpop.f32.mrf.mxu2 }
 0x225   : > { %v1143_v56 = vpack.c.bf16 %v1013_v55, %v1011_v53 }
 0x227   : > { %1244 = vmatmul.bf16.gmra.mxu3 %v1143_v56 }
 0x229   : > { %1055 = vmatmul.bf16.gmra.mxu2 %v918_v58  ;;  %v2265_v58 = vld [vmem:[#allocation9 + $0x8] sm:$0xff] }
 0x22a   : > { %1698 = vmatpush.bf16.msrb.mxu1 %v2265_v58 }
 0x22c   : > { %v1016_v60 = vpop.f32.mrf.mxu2 }
 0x234   : > { %v1018_v61 = vpop.f32.mrf.mxu2 }
 0x235   : > { %v1144_v62 = vpack.c.bf16 %v1018_v61, %v1016_v60 }
 0x237   : > { %1249 = vmatmul.bf16.gmra.mxu3 %v1144_v62 }
 0x239   : > { %1060 = vmatmul.bf16.gmra.mxu2 %v919_v1  ;;  %v2264_v1 = vld [vmem:[#allocation9] sm:$0xff] }
 0x23a   : > { %1699 = vmatpush.bf16.msrb.mxu1 %v2264_v1 }
 0x23c   : > { %v1021_v2 = vpop.f32.mrf.mxu2 }
 0x244   : > { %v1023_v4 = vpop.f32.mrf.mxu2 }
 0x245   : > { %v1145_v5 = vpack.c.bf16 %v1023_v4, %v1021_v2 }
 0x247   : > { %1254 = vmatmul.bf16.gmra.mxu3 %v1145_v5 }
 0x249   : > { %1065 = vmatmul.bf16.gmra.mxu2 %v920_v7 }
 0x24c   : > { %v1026_v9 = vpop.f32.mrf.mxu2 }
 0x254   : > { %v1028_v11 = vpop.f32.mrf.mxu2 }
 0x255   : > { %v1146_v12 = vpack.c.bf16 %v1028_v11, %v1026_v9 }
 0x257   : > { %1259 = vmatmul.bf16.gmra.mxu3 %v1146_v12 }
 0x259   : > { %1070 = vmatmul.bf16.gmra.mxu2 %v921_v14 }
 0x25c   : > { %v1031_v15 = vpop.f32.mrf.mxu2 }
 0x264   : > { %v1033_v16 = vpop.f32.mrf.mxu2 }
 0x265   : > { %v1147_v17 = vpack.c.bf16 %v1033_v16, %v1031_v15 }
 0x267   : > { %1264 = vmatmul.bf16.gmra.mxu3 %v1147_v17 }
 0x26c   : > { %v1036_v18 = vpop.f32.mrf.mxu2 }
 0x274   : > { %v1038_v32 = vpop.f32.mrf.mxu2 }
 0x275   : > { %v1148_v20 = vpack.c.bf16 %v1038_v32, %v1036_v18 }
 0x277   : > { %1269 = vmatmul.bf16.gmra.mxu3 %v1148_v20 }
 0x27a   : > { %v1230_v21 = vpop.f32.mrf.mxu3 }
 0x27c   : > { %v1041_v22 = vpop.f32.mrf.mxu2 }
 0x282   : > { %v1232_v24 = vpop.f32.mrf.mxu3 }
 0x283   : > { %v1374_v25 = vpack.c.bf16 %v1232_v24, %v1230_v21 }
 0x284   : > { %v1043_v26 = vpop.f32.mrf.mxu2 }
 0x285   : > { %v1149_v27 = vpack.c.bf16 %v1043_v26, %v1041_v22  ;;  %1463 = vmatmul.bf16.vlgmr.msrb.gmra.mxu0 %v1374_v25 }
 0x287   : > { %1274 = vmatmul.bf16.gmra.mxu3 %v1149_v27 }
 0x28a   : > { %v1235_v28 = vpop.f32.mrf.mxu3 }
 0x28c   : > { %v1046_v29 = vpop.f32.mrf.mxu2 }
 0x292   : > { %v1237_v31 = vpop.f32.mrf.mxu3 }
 0x293   : > { %v1375_v33 = vpack.c.bf16 %v1237_v31, %v1235_v28 }
 0x294   : > { %v1048_v34 = vpop.f32.mrf.mxu2 }
 0x295   : > { %v1150_v35 = vpack.c.bf16 %v1048_v34, %v1046_v29  ;;  %1468 = vmatmul.bf16.gmra.mxu0 %v1375_v33 }
 0x297   : > { %1279 = vmatmul.bf16.gmra.mxu3 %v1150_v35 }
 0x29a   : > { %v1240_v36 = vpop.f32.mrf.mxu3 }
 0x29c   : > { %v1051_v37 = vpop.f32.mrf.mxu2 }
 0x2a2   : > { %v1242_v39 = vpop.f32.mrf.mxu3 }
 0x2a3   : > { %v1376_v40 = vpack.c.bf16 %v1242_v39, %v1240_v36 }
 0x2a4   : > { %v1053_v41 = vpop.f32.mrf.mxu2 }
 0x2a5   : > { %v1151_v42 = vpack.c.bf16 %v1053_v41, %v1051_v37  ;;  %1473 = vmatmul.bf16.gmra.mxu0 %v1376_v40 }
 0x2a7   : > { %1284 = vmatmul.bf16.gmra.mxu3 %v1151_v42 }
 0x2aa   : > { %v1245_v43 = vpop.f32.mrf.mxu3 }
 0x2ac   : > { %v1056_v44 = vpop.f32.mrf.mxu2 }
 0x2b2   : > { %v1247_v46 = vpop.f32.mrf.mxu3 }
 0x2b3   : > { %v1377_v47 = vpack.c.bf16 %v1247_v46, %v1245_v43 }
 0x2b4   : > { %v1058_v48 = vpop.f32.mrf.mxu2 }
 0x2b5   : > { %v1152_v49 = vpack.c.bf16 %v1058_v48, %v1056_v44  ;;  %1478 = vmatmul.bf16.gmra.mxu0 %v1377_v47 }
 0x2b7   : > { %1289 = vmatmul.bf16.gmra.mxu3 %v1152_v49 }
 0x2ba   : > { %v1250_v50 = vpop.f32.mrf.mxu3 }
 0x2bc   : > { %v1061_v51 = vpop.f32.mrf.mxu2 }
 0x2c2   : > { %v1252_v53 = vpop.f32.mrf.mxu3 }
 0x2c3   : > { %v1378_v54 = vpack.c.bf16 %v1252_v53, %v1250_v50 }
 0x2c4   : > { %v1063_v55 = vpop.f32.mrf.mxu2 }
 0x2c5   : > { %v1153_v56 = vpack.c.bf16 %v1063_v55, %v1061_v51  ;;  %1483 = vmatmul.bf16.gmra.mxu0 %v1378_v54 }
 0x2c7   : > { %1294 = vmatmul.bf16.gmra.mxu3 %v1153_v56 }
 0x2ca   : > { %v1255_v57 = vpop.f32.mrf.mxu3 }
 0x2cc   : > { %v1066_v59 = vpop.f32.mrf.mxu2 }
 0x2d2   : > { %v1257_v60 = vpop.f32.mrf.mxu3 }
 0x2d3   : > { %v1379_v61 = vpack.c.bf16 %v1257_v60, %v1255_v57 }
 0x2d4   : > { %v1068_v62 = vpop.f32.mrf.mxu2 }
 0x2d5   : > { %v1154_v63 = vpack.c.bf16 %v1068_v62, %v1066_v59  ;;  %1488 = vmatmul.bf16.gmra.mxu0 %v1379_v61  ;;  %v2806_v59 = vld [vmem:[%s2913_s5] ss:$0 sm:$0xff] }
 0x2d7   : > { %1299 = vmatmul.bf16.gmra.mxu3 %v1154_v63 }
 0x2da   : > { %v1260_v0 = vpop.f32.mrf.mxu3 }
 0x2dc   : > { %v1071_v2 = vpop.f32.mrf.mxu2 }
 0x2e2   : > { %v1262_v3 = vpop.f32.mrf.mxu3 }
 0x2e3   : > { %v1380_v4 = vpack.c.bf16 %v1262_v3, %v1260_v0 }
 0x2e4   : > { %v1073_v5 = vpop.f32.mrf.mxu2 }
 0x2e5   : > { %v1155_v6 = vpack.c.bf16 %v1073_v5, %v1071_v2  ;;  %1493 = vmatmul.bf16.gmra.mxu0 %v1380_v4 }
 0x2e7   : > { %1304 = vmatmul.bf16.gmra.mxu3 %v1155_v6 }
 0x2ea   : > { %v1265_v7 = vpop.f32.mrf.mxu3 }
 0x2f2   : > { %v1267_v8 = vpop.f32.mrf.mxu3 }
 0x2f3   : > { %v1381_v9 = vpack.c.bf16 %v1267_v8, %v1265_v7 }
 0x2f5   : > { %1498 = vmatmul.bf16.gmra.mxu0 %v1381_v9 }
 0x2fa   : > { %v1270_v10 = vpop.f32.mrf.mxu3 }
 0x302   : > { %v1272_v11 = vpop.f32.mrf.mxu3  ;;  %v1464_v12 = vpop.f32.mrf.mxu0 }
 0x303   : > { %v1382_v13 = vpack.c.bf16 %v1272_v11, %v1270_v10 }
 0x305   : > { %1503 = vmatmul.bf16.gmra.mxu0 %v1382_v13 }
 0x30a   : > { %v1275_v14 = vpop.f32.mrf.mxu3  ;;  %v1466_v15 = vpop.f32.mrf.mxu0 }
 0x30b   : > { %v1608_v16 = vpack.c.bf16 %v1466_v15, %v1464_v12 }
 0x30d   : > { %1700 = vmatmul.bf16.vlgmr.msrb.gmra.mxu1 %v1608_v16 }
 0x312   : > { %v1277_v17 = vpop.f32.mrf.mxu3  ;;  %v1469_v18 = vpop.f32.mrf.mxu0 }
 0x313   : > { %v1383_v19 = vpack.c.bf16 %v1277_v17, %v1275_v14 }
 0x315   : > { %1508 = vmatmul.bf16.gmra.mxu0 %v1383_v19 }
 0x31a   : > { %v1280_v32 = vpop.f32.mrf.mxu3  ;;  %v1471_v20 = vpop.f32.mrf.mxu0 }
 0x31b   : > { %v1609_v21 = vpack.c.bf16 %v1471_v20, %v1469_v18 }
 0x31d   : > { %1705 = vmatmul.bf16.gmra.mxu1 %v1609_v21 }
 0x322   : > { %v1282_v22 = vpop.f32.mrf.mxu3  ;;  %v1474_v23 = vpop.f32.mrf.mxu0 }
 0x323   : > { %v1384_v24 = vpack.c.bf16 %v1282_v22, %v1280_v32 }
 0x325   : > { %1513 = vmatmul.bf16.gmra.mxu0 %v1384_v24 }
 0x32a   : > { %v1285_v25 = vpop.f32.mrf.mxu3  ;;  %v1476_v26 = vpop.f32.mrf.mxu0 }
 0x32b   : > { %v1610_v27 = vpack.c.bf16 %v1476_v26, %v1474_v23 }
 0x32d   : > { %1710 = vmatmul.bf16.gmra.mxu1 %v1610_v27 }
 0x332   : > { %v1287_v28 = vpop.f32.mrf.mxu3  ;;  %v1479_v29 = vpop.f32.mrf.mxu0 }
 0x333   : > { %v1385_v30 = vpack.c.bf16 %v1287_v28, %v1285_v25 }
 0x335   : > { %1518 = vmatmul.bf16.gmra.mxu0 %v1385_v30 }
 0x33a   : > { %v1290_v31 = vpop.f32.mrf.mxu3  ;;  %v1481_v33 = vpop.f32.mrf.mxu0 }
 0x33b   : > { %v1611_v34 = vpack.c.bf16 %v1481_v33, %v1479_v29 }
 0x33d   : > { %1715 = vmatmul.bf16.gmra.mxu1 %v1611_v34 }
 0x342   : > { %v1292_v35 = vpop.f32.mrf.mxu3  ;;  %v1484_v36 = vpop.f32.mrf.mxu0 }
 0x343   : > { %v1386_v37 = vpack.c.bf16 %v1292_v35, %v1290_v31 }
 0x345   : > { %1523 = vmatmul.bf16.gmra.mxu0 %v1386_v37 }
 0x34a   : > { %v1295_v38 = vpop.f32.mrf.mxu3  ;;  %v1486_v39 = vpop.f32.mrf.mxu0 }
 0x34b   : > { %v1612_v40 = vpack.c.bf16 %v1486_v39, %v1484_v36 }
 0x34d   : > { %1720 = vmatmul.bf16.gmra.mxu1 %v1612_v40 }
 0x352   : > { %v1297_v41 = vpop.f32.mrf.mxu3  ;;  %v1489_v42 = vpop.f32.mrf.mxu0 }
 0x353   : > { %v1387_v43 = vpack.c.bf16 %v1297_v41, %v1295_v38 }
 0x355   : > { %1528 = vmatmul.bf16.gmra.mxu0 %v1387_v43 }
 0x35a   : > { %v1300_v44 = vpop.f32.mrf.mxu3  ;;  %v1491_v45 = vpop.f32.mrf.mxu0 }
 0x35b   : > { %v1613_v46 = vpack.c.bf16 %v1491_v45, %v1489_v42 }
 0x35d   : > { %1725 = vmatmul.bf16.gmra.mxu1 %v1613_v46 }
 0x362   : > { %v1302_v47 = vpop.f32.mrf.mxu3  ;;  %v1494_v48 = vpop.f32.mrf.mxu0 }
 0x363   : > { %v1388_v49 = vpack.c.bf16 %v1302_v47, %v1300_v44 }
 0x365   : > { %1533 = vmatmul.bf16.gmra.mxu0 %v1388_v49 }
 0x36a   : > { %v1305_v50 = vpop.f32.mrf.mxu3  ;;  %v1496_v51 = vpop.f32.mrf.mxu0 }
 0x36b   : > { %v1614_v52 = vpack.c.bf16 %v1496_v51, %v1494_v48 }
 0x36d   : > { %1730 = vmatmul.bf16.gmra.mxu1 %v1614_v52 }
 0x372   : > { %v1307_v53 = vpop.f32.mrf.mxu3  ;;  %v1499_v54 = vpop.f32.mrf.mxu0 }
 0x373   : > { %v1389_v55 = vpack.c.bf16 %v1307_v53, %v1305_v50 }
 0x375   : > { %1538 = vmatmul.bf16.gmra.mxu0 %v1389_v55 }
 0x37a   : > { %v1501_v56 = vpop.f32.mrf.mxu0 }
 0x37b   : > { %v1615_v57 = vpack.c.bf16 %v1501_v56, %v1499_v54 }
 0x37d   : > { %1735 = vmatmul.bf16.gmra.mxu1 %v1615_v57 }
 0x382   : > { %v1504_v58 = vpop.f32.mrf.mxu0 }
 0x38a   : > { %v1506_v60 = vpop.f32.mrf.mxu0  ;;  %v1701_v61 = vpop.f32.mrf.mxu1 }
 0x38b   : > { %v1616_v62 = vpack.c.bf16 %v1506_v60, %v1504_v58  ;;  %v1702_v63 = vadd.f32 %v2806_v59, %v1701_v61 }
 0x38d   : > { %1781 = vst [vmem:[%s2809_s10] sm:$0xff] %v1702_v63  ;;  %1740 = vmatmul.bf16.gmra.mxu1 %v1616_v62 }
 0x392   : > { %v1509_v0 = vpop.f32.mrf.mxu0  ;;  %v1703_v1 = vpop.f32.mrf.mxu1 }
 0x393   : > { %v1704_v2 = vadd.f32 %v2806_v59, %v1703_v1 }
 0x395   : > { %1782 = vst [vmem:[%s2809_s10 + $0x8] sm:$0xff] %v1704_v2 }
 0x39a   : > { %v1511_v3 = vpop.f32.mrf.mxu0  ;;  %v1706_v4 = vpop.f32.mrf.mxu1 }
 0x39b   : > { %v1617_v5 = vpack.c.bf16 %v1511_v3, %v1509_v0  ;;  %v1707_v6 = vadd.f32 %v2806_v59, %v1706_v4 }
 0x39d   : > { %1783 = vst [vmem:[%s2809_s10 + $0x10] sm:$0xff] %v1707_v6  ;;  %1745 = vmatmul.bf16.gmra.mxu1 %v1617_v5 }
 0x3a2   : > { %v1514_v7 = vpop.f32.mrf.mxu0  ;;  %v1708_v8 = vpop.f32.mrf.mxu1 }
 0x3a3   : > { %v1709_v9 = vadd.f32 %v2806_v59, %v1708_v8 }
 0x3a5   : > { %1784 = vst [vmem:[%s2809_s10 + $0x18] sm:$0xff] %v1709_v9 }
 0x3aa   : > { %v1516_v10 = vpop.f32.mrf.mxu0  ;;  %v1711_v11 = vpop.f32.mrf.mxu1 }
 0x3ab   : > { %v1618_v12 = vpack.c.bf16 %v1516_v10, %v1514_v7  ;;  %v1712_v13 = vadd.f32 %v2806_v59, %v1711_v11 }
 0x3ad   : > { %1785 = vst [vmem:[%s2809_s10 + $0x20] sm:$0xff] %v1712_v13  ;;  %1750 = vmatmul.bf16.gmra.mxu1 %v1618_v12 }
 0x3b2   : > { %v1519_v14 = vpop.f32.mrf.mxu0  ;;  %v1713_v15 = vpop.f32.mrf.mxu1 }
 0x3b3   : > { %v1714_v16 = vadd.f32 %v2806_v59, %v1713_v15 }
 0x3b5   : > { %1786 = vst [vmem:[%s2809_s10 + $0x28] sm:$0xff] %v1714_v16 }
 0x3ba   : > { %v1521_v17 = vpop.f32.mrf.mxu0  ;;  %v1716_v18 = vpop.f32.mrf.mxu1 }
 0x3bb   : > { %v1619_v19 = vpack.c.bf16 %v1521_v17, %v1519_v14  ;;  %v1717_v32 = vadd.f32 %v2806_v59, %v1716_v18 }
 0x3bd   : > { %1787 = vst [vmem:[%s2809_s10 + $0x30] sm:$0xff] %v1717_v32  ;;  %1755 = vmatmul.bf16.gmra.mxu1 %v1619_v19 }
 0x3c2   : > { %v1524_v20 = vpop.f32.mrf.mxu0  ;;  %v1718_v21 = vpop.f32.mrf.mxu1 }
 0x3c3   : > { %v1719_v22 = vadd.f32 %v2806_v59, %v1718_v21 }
 0x3c5   : > { %1788 = vst [vmem:[%s2809_s10 + $0x38] sm:$0xff] %v1719_v22 }
 0x3ca   : > { %v1526_v23 = vpop.f32.mrf.mxu0  ;;  %v1721_v24 = vpop.f32.mrf.mxu1 }
 0x3cb   : > { %v1620_v25 = vpack.c.bf16 %v1526_v23, %v1524_v20  ;;  %v1722_v26 = vadd.f32 %v2806_v59, %v1721_v24 }
 0x3cd   : > { %1789 = vst [vmem:[%s2809_s10 + $0x40] sm:$0xff] %v1722_v26  ;;  %1760 = vmatmul.bf16.gmra.mxu1 %v1620_v25 }
 0x3d2   : > { %v1529_v27 = vpop.f32.mrf.mxu0  ;;  %v1723_v28 = vpop.f32.mrf.mxu1 }
 0x3d3   : > { %v1724_v29 = vadd.f32 %v2806_v59, %v1723_v28 }
 0x3d5   : > { %1790 = vst [vmem:[%s2809_s10 + $0x48] sm:$0xff] %v1724_v29 }
 0x3da   : > { %v1531_v30 = vpop.f32.mrf.mxu0  ;;  %v1726_v31 = vpop.f32.mrf.mxu1 }
 0x3db   : > { %v1621_v33 = vpack.c.bf16 %v1531_v30, %v1529_v27  ;;  %v1727_v34 = vadd.f32 %v2806_v59, %v1726_v31 }
 0x3dd   : > { %1791 = vst [vmem:[%s2809_s10 + $0x50] sm:$0xff] %v1727_v34  ;;  %1765 = vmatmul.bf16.gmra.mxu1 %v1621_v33 }
 0x3e2   : > { %v1534_v35 = vpop.f32.mrf.mxu0  ;;  %v1728_v36 = vpop.f32.mrf.mxu1 }
 0x3e3   : > { %v1729_v37 = vadd.f32 %v2806_v59, %v1728_v36 }
 0x3e5   : > { %1792 = vst [vmem:[%s2809_s10 + $0x58] sm:$0xff] %v1729_v37 }
 0x3ea   : > { %v1536_v38 = vpop.f32.mrf.mxu0  ;;  %v1731_v39 = vpop.f32.mrf.mxu1 }
 0x3eb   : > { %v1622_v40 = vpack.c.bf16 %v1536_v38, %v1534_v35  ;;  %v1732_v41 = vadd.f32 %v2806_v59, %v1731_v39 }
 0x3ed   : > { %1793 = vst [vmem:[%s2809_s10 + $0x60] sm:$0xff] %v1732_v41  ;;  %1770 = vmatmul.bf16.gmra.mxu1 %v1622_v40 }
 0x3f2   : > { %v1539_v42 = vpop.f32.mrf.mxu0  ;;  %v1733_v43 = vpop.f32.mrf.mxu1 }
 0x3f3   : > { %v1734_v44 = vadd.f32 %v2806_v59, %v1733_v43 }
 0x3f5   : > { %1794 = vst [vmem:[%s2809_s10 + $0x68] sm:$0xff] %v1734_v44 }
 0x3fa   : > { %v1541_v45 = vpop.f32.mrf.mxu0  ;;  %v1736_v46 = vpop.f32.mrf.mxu1 }
 0x3fb   : > { %v1623_v47 = vpack.c.bf16 %v1541_v45, %v1539_v42  ;;  %v1737_v48 = vadd.f32 %v2806_v59, %v1736_v46 }
 0x3fd   : > { %1795 = vst [vmem:[%s2809_s10 + $0x70] sm:$0xff] %v1737_v48  ;;  %1775 = vmatmul.bf16.gmra.mxu1 %v1623_v47 }
 0x402   : > { %v1738_v49 = vpop.f32.mrf.mxu1 }
 0x403   : > { %v1739_v50 = vadd.f32 %v2806_v59, %v1738_v49 }
 0x405   : > { %1796 = vst [vmem:[%s2809_s10 + $0x78] sm:$0xff] %v1739_v50 }
 0x40a   : > { %v1741_v51 = vpop.f32.mrf.mxu1 }
 0x40b   : > { %v1742_v52 = vadd.f32 %v2806_v59, %v1741_v51 }
 0x40d   : > { %1797 = vst [vmem:[%s2809_s10 + $0x80] sm:$0xff] %v1742_v52 }
 0x412   : > { %v1743_v53 = vpop.f32.mrf.mxu1 }
 0x413   : > { %v1744_v54 = vadd.f32 %v2806_v59, %v1743_v53 }
 0x415   : > { %1798 = vst [vmem:[%s2809_s10 + $0x88] sm:$0xff] %v1744_v54 }
 0x41a   : > { %v1746_v55 = vpop.f32.mrf.mxu1 }
 0x41b   : > { %v1747_v56 = vadd.f32 %v2806_v59, %v1746_v55 }
 0x41d   : > { %1799 = vst [vmem:[%s2809_s10 + $0x90] sm:$0xff] %v1747_v56 }
 0x422   : > { %v1748_v57 = vpop.f32.mrf.mxu1 }
 0x423   : > { %v1749_v58 = vadd.f32 %v2806_v59, %v1748_v57 }
 0x425   : > { %1800 = vst [vmem:[%s2809_s10 + $0x98] sm:$0xff] %v1749_v58 }
 0x42a   : > { %v1751_v60 = vpop.f32.mrf.mxu1 }
 0x42b   : > { %v1752_v61 = vadd.f32 %v2806_v59, %v1751_v60 }
 0x42d   : > { %1801 = vst [vmem:[%s2809_s10 + $0xa0] sm:$0xff] %v1752_v61 }
 0x432   : > { %v1753_v62 = vpop.f32.mrf.mxu1 }
 0x433   : > { %v1754_v63 = vadd.f32 %v2806_v59, %v1753_v62 }
 0x435   : > { %1802 = vst [vmem:[%s2809_s10 + $0xa8] sm:$0xff] %v1754_v63 }
 0x43a   : > { %v1756_v0 = vpop.f32.mrf.mxu1 }
 0x43b   : > { %v1757_v1 = vadd.f32 %v2806_v59, %v1756_v0 }
 0x43d   : > { %1803 = vst [vmem:[%s2809_s10 + $0xb0] sm:$0xff] %v1757_v1 }
 0x442   : > { %v1758_v2 = vpop.f32.mrf.mxu1 }
 0x443   : > { %v1759_v3 = vadd.f32 %v2806_v59, %v1758_v2 }
 0x445   : > { %1804 = vst [vmem:[%s2809_s10 + $0xb8] sm:$0xff] %v1759_v3 }
 0x44a   : > { %v1761_v4 = vpop.f32.mrf.mxu1 }
 0x44b   : > { %v1762_v5 = vadd.f32 %v2806_v59, %v1761_v4 }
 0x44d   : > { %1805 = vst [vmem:[%s2809_s10 + $0xc0] sm:$0xff] %v1762_v5 }
 0x452   : > { %v1763_v6 = vpop.f32.mrf.mxu1 }
 0x453   : > { %v1764_v7 = vadd.f32 %v2806_v59, %v1763_v6 }
 0x455   : > { %1806 = vst [vmem:[%s2809_s10 + $0xc8] sm:$0xff] %v1764_v7 }
 0x45a   : > { %v1766_v8 = vpop.f32.mrf.mxu1 }
 0x45b   : > { %v1767_v9 = vadd.f32 %v2806_v59, %v1766_v8 }
 0x45d   : > { %1807 = vst [vmem:[%s2809_s10 + $0xd0] sm:$0xff] %v1767_v9 }
 0x462   : > { %v1768_v10 = vpop.f32.mrf.mxu1 }
 0x463   : > { %v1769_v11 = vadd.f32 %v2806_v59, %v1768_v10 }
 0x465   : > { %1808 = vst [vmem:[%s2809_s10 + $0xd8] sm:$0xff] %v1769_v11 }
 0x46a   : > { %v1771_v12 = vpop.f32.mrf.mxu1 }
 0x46b   : > { %v1772_v13 = vadd.f32 %v2806_v59, %v1771_v12 }
 0x46d   : > { %1809 = vst [vmem:[%s2809_s10 + $0xe0] sm:$0xff] %v1772_v13 }
 0x472   : > { %v1773_v14 = vpop.f32.mrf.mxu1 }
 0x473   : > { %v1774_v15 = vadd.f32 %v2806_v59, %v1773_v14 }
 0x475   : > { %1810 = vst [vmem:[%s2809_s10 + $0xe8] sm:$0xff] %v1774_v15 }
 0x47a   : > { %v1776_v16 = vpop.f32.mrf.mxu1 }
 0x47b   : > { %v1777_v17 = vadd.f32 %v2806_v59, %v1776_v16 }
 0x47d   : > { %1811 = vst [vmem:[%s2809_s10 + $0xf0] sm:$0xff] %v1777_v17 }
 0x482   : > { %v1778_v18 = vpop.f32.mrf.mxu1 }
 0x483   : > { %v1779_v19 = vadd.f32 %v2806_v59, %v1778_v18 }
 0x485   : > { %1812 = vst [vmem:[%s2809_s10 + $0xf8] sm:$0xff] %v1779_v19 }
 0x486   : > { %2519 = shalt.err (!%p2516_p10)
}
 0x487   : > { %s2573_s11 = smov 128   ;;  %s2574_s10 = smov 8  }
 0x488   : > { %2303 = dma.vmem_to_hbm [thread:$0]  (%p2701_p3), %s1827_s29, 4096, %s1829_s15, %s1814_s16, %s2573_s11, %s2573_s11, %s2574_s10  }
 0x489 PF: > { %s1843_s17 = sand.u32 1, %s2554_s21   ;;  %p2925_p12 = scmp.ge.s32.totalorder %s2566_s24, 2 }
 0x48a   : > { %s1844_s19 = scalar_lea.sflag [#allocation5], %s1843_s17 }
 0x48b   : > { %p2320_p13 = pnand %p2925_p12, %p2645_p6 }
 0x48d   : > { %p2321_p0 = pneg %p2320_p13 }
 0x48f   : > { %2549 = dma.done.wait (%p2321_p0), %s1844_s19, 4096  }
 0x490   : > { %2551 = vsyncadd (%p2321_p0), %s1844_s19, 4294963200  ;;  %p21_p5 = scmp.ge.s32.totalorder %s2683_s7, 4   ;;  %s2926_s21 = smov %s2558_s22 }
 0x491   : > { %s2927_s22 = smov %s2562_s23  ;;  %s2928_s23 = smov %s2697_s12 }
 0x492   : > { %s2929_s24 = smov %s2683_s7  ;;  %23 = sbr.rel (!%p21_p5) target bundleno = 7 (0x7), region = 104 }
 0x497   :  { %1850 = vsyncpa [#allocation4], 1 }
 0x498   :  { %1852 = vsyncpa [#allocation4 + $0x1], 1 }
 0x499   :  { %1853 = vsyncpa [#allocation7], 1 }
 0x49a   :  { %1854 = vsyncpa [#allocation10], 1 }
 0x49b   :  { %1855 = vsyncpa [#allocation5], 1 }
 0x49c   :  { %1857 = vsyncpa [#allocation5 + $0x1], 1 }

// kernel: tpu_custom_call.1
= control target key start
LH: loop header
LB: loop body
LE: loop exit
PB: predicated region body
PF: predicated region fallthrough
CT: control target
= control target key end

     0   :  { %11 = vsyncpa [#allocation4], 0  ;;  %s2908_s0 = inlined_call_operand.hbm [shape: bf16[512,128], index: 0, kind: input, shape index: {}]   ;;  %s2909_s1 = inlined_call_operand.hbm [shape: bf16[128,128], index: 1, kind: input, shape index: {}]   ;;  %s2910_s2 = inlined_call_operand.vmem [shape: f32[1,128], index: 2, kind: input, shape index: {}]   ;;  %s2911_s3 = inlined_call_operand.hbm [shape: bf16[4,128,128], index: 3, kind: input, shape index: {}]   ;;  %s2912_s4 = inlined_call_operand.hbm [shape: bf16[128,128], index: 4, kind: input, shape index: {}]   ;;  %s2913_s5 = inlined_call_operand.vmem [shape: f32[1,128], index: 5, kind: input, shape index: {}]   ;;  %s2914_s6 = inlined_call_operand.hbm [shape: f32[512,128], index: 6, kind: output, shape index: {}]  }
   0x1   :  { %13 = vsyncpa [#allocation4 + $0x1], 0 }
   0x2   :  { %14 = vsyncpa [#allocation7], 0 }
   0x3   :  { %15 = vsyncpa [#allocation10], 0 }
   0x4   :  { %16 = vsyncpa [#allocation5], 0 }
   0x5   :  { %18 = vsyncpa [#allocation5 + $0x1], 0  ;;  %s2610_s21 = smov 0   ;;  %s2612_s22 = smov 0  }
   0x6   :  { %s2614_s23 = smov 0   ;;  %s2616_s24 = smov 0  }
   0x7 LB: > { %s2631_s25 = sadd.s32 4294967295, %s2566_s24   ;;  %s1931_s26 = sadd.s32 4294967294, %s2566_s24   ;;  %s2566_s24 = sphi %s2616_s24, %s2929_s24   ;;  %s2562_s23 = sphi %s2614_s23, %s2928_s23   ;;  %s2558_s22 = sphi %s2612_s22, %s2927_s22   ;;  %s2554_s21 = sphi %s2610_s21, %s2926_s21  }
   0x8   : > { %p44_p0 = scmp.ne.s32.totalorder %s2558_s22, %s2554_s21  ;;  %p45_p1 = scmp.eq.s32.totalorder %s2631_s25, 0 }
   0x9   : > { %p173_p2 = scmp.eq.s32.totalorder %s2631_s25, 1  ;;  %p179_p3 = scmp.eq.s32.totalorder %s1931_s26, 1 }
   0xa   : > { %p2640_p4 = por %p45_p1, %p44_p0  ;;  %p1932_p5 = scmp.ge.s32.totalorder %s2566_s24, 1 }
   0xb   : > { %p2645_p6 = por %p179_p3, %p44_p0  ;;  %p186_p7 = scmp.lt.s32.totalorder %s2566_s24, 3 }
   0xc   : > { %s197_s7 = sshll.u32 %s2909_s1, 4  ;;  %s2568_s9 = smov [#allocation6]   ;;  %s198_s7 = int_to_ptr.hbm [resolvable:$true] %s197_s7 }
   0xd   : > { %p2653_p8 = pnand %p1932_p5, %p186_p7  ;;  %s199_s10 = sshll.u32 %s2568_s9, 4  ;;  %s200_s10 = int_to_ptr.vmem [resolvable:$true] %s199_s10 }
   0xe   : > { %s214_s14 = sshll.u32 %s2911_s3, 4  ;;  %s2915_s15 = smov 64   ;;  %s215_s14 = int_to_ptr.hbm [resolvable:$true] %s214_s14 }
   0xf   : > { %p2305_p9 = pneg %p2653_p8  ;;  %s2916_s16 = smov 4  }
  0x10   : > { %s2571_s17 = smov [#allocation8]   ;;  %s228_s26 = sshll.u32 %s2912_s4, 4  ;;  %s229_s26 = int_to_ptr.hbm [resolvable:$true] %s228_s26 }
  0x11   : > { %p2661_p10 = pnand %p2305_p9, %p45_p1  ;;  %s216_s18 = sshll.u32 %s2571_s17, 4  ;;  %s217_s18 = int_to_ptr.vmem [resolvable:$true] %s216_s18 }
  0x12   : > { %s2572_s29 = smov [#allocation9]   ;;  %p38_p13 = scmp.ne.s32.totalorder %s2562_s23, %s2558_s22 }
  0x13   : > { %2308 = dma.hbm_to_vmem [thread:$0]  (!%p2661_p10), %s198_s7, 1024, %s200_s10, [#allocation7], %s2915_s15, %s2915_s15, %s2916_s16  }
  0x14   : > { %2311 = dma.hbm_to_vmem [thread:$0]  (!%p2661_p10), %s215_s14, 4096, %s217_s18, [#allocation7], %s2915_s15, %s2915_s15, %s2916_s16  }
  0x15   : > { %s230_s30 = sshll.u32 %s2572_s29, 4  ;;  %s2683_s7 = sadd.s32 1, %s2566_s24   ;;  %s231_s30 = int_to_ptr.vmem [resolvable:$true] %s230_s30 }
  0x16   : > { %2314 = dma.hbm_to_vmem [thread:$0]  (!%p2661_p10), %s229_s26, 1024, %s231_s30, [#allocation10], %s2915_s15, %s2915_s15, %s2916_s16  }
  0x17   : > { %s28_s9 = ssub.s32 %s2566_s24, %s2683_s7  ;;  %s31_s10 = sadd.s32 1, %s2562_s23 }
  0x18   : > { %p29_p12 = scmp.eq.s32.totalorder %s28_s9, 0  ;;  %p39_p0 = scmp.eq.s32.totalorder %s2566_s24, 0 }
  0x19   : > { %p2701_p3 = por %p173_p2, %p38_p13  ;;  %p2326_p5 = scmp.lt.s32.totalorder %s2566_s24, 2 }
  0x1a   : > { %s2697_s12 = scalar_select %p29_p12, %s2562_s23, %s31_s10  }
  0x1b   : > { %s247_s14 = sand.u32 1, %s2562_s23   ;;  %s2207_s11 = sshll.u32 %s2566_s24, 7 }
  0x1c   : > { %p40_p7 = por %p39_p0, %p38_p13  ;;  %s1937_s17 = sshll.u32 %s247_s14, 7 }
  0x1d   : > { %s256_s20 = scalar_lea.hbm %s2908_s0, %s2207_s11  ;;  %s251_s29 = scalar_lea.vmem [#allocation3], %s1937_s17 }
  0x1e   : > { %s257_s26 = sshll.u32 %s256_s20, 4  ;;  %s259_s30 = sshll.u32 %s251_s29, 4  ;;  %s258_s26 = int_to_ptr.hbm [resolvable:$true] %s257_s26  ;;  %s260_s30 = int_to_ptr.vmem [resolvable:$true] %s259_s30 }
  0x1f   : > { %p2711_p9 = pnand %p2326_p5, %p40_p7  ;;  %s248_s10 = scalar_lea.sflag [#allocation4], %s247_s14 }
  0x20   : > { %s2462_s15 = sshra.s32 %s258_s26, 4  ;;  %s2469_s17 = scalar_lea.hbm %s2908_s0, 256  ;;  %s2463_s15 = int_to_ptr.hbm [resolvable:$true] %s2462_s15 }
  0x21   : > { %s2464_s16 = scalar_lea.hbm %s2463_s15, 128  ;;  %p2466_p10 = pneg %p2711_p9 }
  0x22   : > { %p2465_p2 = scmp.ne.s32.totalorder %s2463_s15, %s2464_s16  ;;  %p2470_p0 = scmp.lt.s32.totalorder %s2463_s15, %s2908_s0 }
  0x23   : > { %p2471_p5 = scmp.lt.s32.totalorder %s2469_s17, %s2464_s16 }
  0x24   : > { %p2467_p12 = pnand %p2466_p10, %p2465_p2 }
  0x25   : > { %p2472_p7 = por %p2471_p5, %p2470_p0 }
  0x26   : > { %p2468_p13 = pneg %p2467_p12 }
  0x28   : > { %p2473_p11 = pnand %p2472_p7, %p2468_p13 }
  0x2a   : > { %2476 = shalt.err (!%p2473_p11)
}
  0x2b   : > { %s2923_s14 = smov 4   ;;  %s2924_s29 = smov 64  }
  0x2c   : > { %2318 = dma.hbm_to_vmem [thread:$0]  (!%p2711_p9), %s258_s26, 2048, %s260_s30, %s248_s10, %s2924_s29, %s2924_s29, %s2923_s14  }
  0x2d   : > { %271 = sbr.rel (%p2653_p8) target bundleno = 1161 (0x489), region = 44  ;;  %s2731_s11 = sand.u32 (!%p2653_p8), 1, %s2558_s22  }
  0x2e   : > { %s1941_s15 = sshll.u32 (!%p2653_p8), %s2731_s11, 7  ;;  %s274_s16 = scalar_lea.sflag (!%p2653_p8), [#allocation4], %s2731_s11 }
  0x2f   : > { %s2735_s18 = scalar_lea.vmem (!%p2653_p8), [#allocation3], %s1941_s15 }
  0x32   : > { %2537 = dma.done.wait (%p2640_p4), %s274_s16, 2048  }
  0x33   : > { %2539 = vsyncadd (%p2640_p4), %s274_s16, 4294965248 }
  0x34   : > { %2541 = dma.done.wait (%p45_p1), [#allocation7], 5120  }
  0x35   : > { %2543 = vsyncadd (%p45_p1), [#allocation7], 4294962176 }
  0x36   : > { %2545 = dma.done.wait (%p45_p1), [#allocation10], 1024  }
  0x37   : > { %2547 = vsyncadd (%p45_p1), [#allocation10], 4294966272  ;;  %v2231_v0 = vld [vmem:[#allocation6 + $0x38] sm:$0xff]  ;;  %v2230_v1 = vld [vmem:[#allocation6 + $0x30] sm:$0xff]  ;;  %s1945_s26 = sshll.u32 %s2731_s11, 8  ;;  %s2272_s17 = sshll.u32 %s2631_s25, 8 }
  0x38   : > { %520 = vmatpush.bf16.msra.mxu0 %v2231_v0  ;;  %2273 = vmatpush.bf16.msra.mxu2 %v2231_v0  ;;  %v2229_v2 = vld [vmem:[#allocation6 + $0x28] sm:$0xff]  ;;  %v2228_v3 = vld [vmem:[#allocation6 + $0x20] sm:$0xff]  ;;  %v2227_v4 = vld [vmem:[#allocation6 + $0x18] sm:$0xff]  ;;  %s2809_s10 = scalar_lea.vmem [#allocation11], %s1945_s26  ;;  %s1825_s14 = scalar_lea.hbm %s2914_s6, %s2272_s17 }
  0x39   : > { %v2226_v5 = vld [vmem:[#allocation6 + $0x10] sm:$0xff]  ;;  %v2225_v6 = vld [vmem:[#allocation6 + $0x8] sm:$0xff]  ;;  %v2224_v7 = vld [vmem:[#allocation6] sm:$0xff]  ;;  %s1826_s29 = sshll.u32 %s2809_s10, 4  ;;  %s1828_s15 = sshll.u32 %s1825_s14, 4  ;;  %s1827_s29 = int_to_ptr.vmem [resolvable:$true] %s1826_s29  ;;  %s1829_s15 = int_to_ptr.hbm [resolvable:$true] %s1828_s15 }
  0x3a   : > { %v2208_v8 = vld [vmem:[%s2735_s18] sm:$0xff]  ;;  %v2209_v9 = vld [vmem:[%s2735_s18 + $0x8] sm:$0xff]  ;;  %v2210_v10 = vld [vmem:[%s2735_s18 + $0x10] sm:$0xff]  ;;  %s1814_s16 = scalar_lea.sflag [#allocation5], %s2731_s11  ;;  %s2512_s26 = scalar_lea.hbm %s2914_s6, 512 }
  0x3b   : > { %v2211_v11 = vld [vmem:[%s2735_s18 + $0x18] sm:$0xff]  ;;  %v2212_v12 = vld [vmem:[%s2735_s18 + $0x20] sm:$0xff]  ;;  %v2238_v15 = vld [vmem:[#allocation8 + $0x30] sm:$0xff] }
  0x3c   : > { %521 = vmatpush.bf16.msra.mxu0 %v2230_v1  ;;  %2274 = vmatpush.bf16.msra.mxu2 %v2230_v1  ;;  %v2216_v13 = vld [vmem:[%s2735_s18 + $0x40] sm:$0xff]  ;;  %v2239_v14 = vld [vmem:[#allocation8 + $0x38] sm:$0xff]  ;;  %v2213_v16 = vld [vmem:[%s2735_s18 + $0x28] sm:$0xff] }
  0x3d   : > { %753 = vmatpush.bf16.msra.mxu1 %v2239_v14  ;;  %2281 = vmatpush.bf16.msra.mxu3 %v2239_v14  ;;  %v2237_v17 = vld [vmem:[#allocation8 + $0x28] sm:$0xff]  ;;  %v2236_v19 = vld [vmem:[#allocation8 + $0x20] sm:$0xff]  ;;  %v2235_v20 = vld [vmem:[#allocation8 + $0x18] sm:$0xff] }
  0x3e   : > { %v2217_v18 = vld [vmem:[%s2735_s18 + $0x48] sm:$0xff]  ;;  %v2214_v21 = vld [vmem:[%s2735_s18 + $0x30] sm:$0xff]  ;;  %v2232_v25 = vld [vmem:[#allocation8] sm:$0xff] }
  0x3f   : > { %v2234_v22 = vld [vmem:[#allocation8 + $0x10] sm:$0xff]  ;;  %v2233_v24 = vld [vmem:[#allocation8 + $0x8] sm:$0xff]  ;;  %v2215_v26 = vld [vmem:[%s2735_s18 + $0x38] sm:$0xff] }
  0x40   : > { %522 = vmatpush.bf16.msra.mxu0 %v2229_v2  ;;  %2275 = vmatpush.bf16.msra.mxu2 %v2229_v2  ;;  %v2218_v23 = vld [vmem:[%s2735_s18 + $0x50] sm:$0xff]  ;;  %v2247_v27 = vld [vmem:[#allocation8 + $0x78] sm:$0xff]  ;;  %v2220_v31 = vld [vmem:[%s2735_s18 + $0x60] sm:$0xff] }
  0x41   : > { %754 = vmatpush.bf16.msra.mxu1 %v2238_v15  ;;  %2282 = vmatpush.bf16.msra.mxu3 %v2238_v15  ;;  %v2219_v28 = vld [vmem:[%s2735_s18 + $0x58] sm:$0xff]  ;;  %v2246_v30 = vld [vmem:[#allocation8 + $0x70] sm:$0xff]  ;;  %v2765_v32 = vld [vmem:[%s2910_s2] ss:$0 sm:$0xff] }
  0x42   : > { %v2245_v38 = vld [vmem:[#allocation8 + $0x68] sm:$0xff]  ;;  %v2244_v45 = vld [vmem:[#allocation8 + $0x60] sm:$0xff]  ;;  %v2222_v46 = vld [vmem:[%s2735_s18 + $0x70] sm:$0xff] }
  0x43   : > { %v2221_v39 = vld [vmem:[%s2735_s18 + $0x68] sm:$0xff]  ;;  %v2243_v52 = vld [vmem:[#allocation8 + $0x58] sm:$0xff]  ;;  %v2242_v59 = vld [vmem:[#allocation8 + $0x50] sm:$0xff] }
  0x44   : > { %523 = vmatpush.bf16.msra.mxu0 %v2228_v3  ;;  %2276 = vmatpush.bf16.msra.mxu2 %v2228_v3  ;;  %v2223_v53 = vld [vmem:[%s2735_s18 + $0x78] sm:$0xff]  ;;  %s2506_s18 = sshra.s32 %s1829_s15, 4  ;;  %s2507_s18 = int_to_ptr.hbm [resolvable:$true] %s2506_s18 }
  0x45   : > { %755 = vmatpush.bf16.msra.mxu1 %v2237_v17  ;;  %2283 = vmatpush.bf16.msra.mxu3 %v2237_v17  ;;  %s2508_s25 = scalar_lea.hbm %s2507_s18, 256  ;;  %p2513_p11 = scmp.lt.s32.totalorder %s2507_s18, %s2914_s6 }
  0x46   : > { %p2509_p1 = scmp.ne.s32.totalorder %s2507_s18, %s2508_s25  ;;  %p2514_p9 = scmp.lt.s32.totalorder %s2512_s26, %s2508_s25 }
  0x48   : > { %524 = vmatpush.bf16.msra.mxu0 %v2227_v4  ;;  %2277 = vmatpush.bf16.msra.mxu2 %v2227_v4  ;;  %v2241_v4 = vld [vmem:[#allocation8 + $0x48] sm:$0xff]  ;;  %p2510_p4 = pnand %p2509_p1, %p2701_p3  ;;  %p2515_p2 = por %p2514_p9, %p2513_p11 }
  0x49   : > { %756 = vmatpush.bf16.msra.mxu1 %v2236_v19  ;;  %2284 = vmatpush.bf16.msra.mxu3 %v2236_v19 }
  0x4a   : > { %p2511_p8 = pneg %p2510_p4 }
  0x4c   : > { %525 = vmatpush.bf16.msra.mxu0 %v2226_v5  ;;  %2278 = vmatpush.bf16.msra.mxu2 %v2226_v5  ;;  %p2516_p10 = pnand %p2515_p2, %p2511_p8 }
  0x4d   : > { %757 = vmatpush.bf16.msra.mxu1 %v2235_v20  ;;  %2285 = vmatpush.bf16.msra.mxu3 %v2235_v20 }
  0x50   : > { %526 = vmatpush.bf16.msra.mxu0 %v2225_v6  ;;  %2279 = vmatpush.bf16.msra.mxu2 %v2225_v6 }
  0x51   : > { %758 = vmatpush.bf16.msra.mxu1 %v2234_v22  ;;  %2286 = vmatpush.bf16.msra.mxu3 %v2234_v22 }
  0x54   : > { %527 = vmatpush.bf16.msra.mxu0 %v2224_v7  ;;  %2280 = vmatpush.bf16.msra.mxu2 %v2224_v7 }
  0x55   : > { %759 = vmatpush.bf16.msra.mxu1 %v2233_v24  ;;  %2287 = vmatpush.bf16.msra.mxu3 %v2233_v24 }
  0x57   : > { %528 = vmatmul.bf16.vlgmr.msra.gmra.mxu0 %v2208_v8  ;;  %568 = vmatmul.bf16.vlgmr.msra.gmra.mxu2 %v2216_v13 }
  0x58   : > { %987 = vmatpush.bf16.msrb.mxu2 %v2247_v27 }
  0x59   : > { %760 = vmatpush.bf16.msra.mxu1 %v2232_v25  ;;  %2288 = vmatpush.bf16.msra.mxu3 %v2232_v25 }
  0x5c   : > { %988 = vmatpush.bf16.msrb.mxu2 %v2246_v30 }
  0x60   : > { %989 = vmatpush.bf16.msrb.mxu2 %v2245_v38 }
  0x64   : > { %990 = vmatpush.bf16.msrb.mxu2 %v2244_v45  ;;  %v2254_v45 = vld [vmem:[#allocation8 + $0xb0] sm:$0xff] }
  0x67   : > { %533 = vmatmul.bf16.gmra.mxu0 %v2209_v9  ;;  %573 = vmatmul.bf16.gmra.mxu2 %v2217_v18 }
  0x68   : > { %991 = vmatpush.bf16.msrb.mxu2 %v2243_v52 }
  0x6c   : > { %992 = vmatpush.bf16.msrb.mxu2 %v2242_v59 }
  0x70   : > { %993 = vmatpush.bf16.msrb.mxu2 %v2241_v4 }
  0x77   : > { %538 = vmatmul.bf16.gmra.mxu0 %v2210_v10  ;;  %578 = vmatmul.bf16.gmra.mxu2 %v2218_v23 }
  0x87   : > { %543 = vmatmul.bf16.gmra.mxu0 %v2211_v11  ;;  %583 = vmatmul.bf16.gmra.mxu2 %v2219_v28 }
  0x97   : > { %548 = vmatmul.bf16.gmra.mxu0 %v2212_v12  ;;  %588 = vmatmul.bf16.gmra.mxu2 %v2220_v31  ;;  %v2240_v12 = vld [vmem:[#allocation8 + $0x40] sm:$0xff] }
  0x98   : > { %994 = vmatpush.bf16.msrb.mxu2 %v2240_v12 }
  0xa7   : > { %553 = vmatmul.bf16.gmra.mxu0 %v2213_v16  ;;  %593 = vmatmul.bf16.gmra.mxu2 %v2221_v39 }
  0xb7   : > { %558 = vmatmul.bf16.gmra.mxu0 %v2214_v21  ;;  %598 = vmatmul.bf16.gmra.mxu2 %v2222_v46 }
  0xc7   : > { %563 = vmatmul.bf16.gmra.mxu0 %v2215_v26  ;;  %603 = vmatmul.bf16.gmra.mxu2 %v2223_v53 }
  0xd4   : > { %v529_v29 = vpop.f32.mrf.mxu0 }
  0xd5   : > { %v530_v34 = vadd.f32 %v2765_v32, %v529_v29 }
  0xda   : > { %v569_v63 = vpop.f32.mrf.mxu2 }
  0xdb   : > { %v570_v2 = vadd.f32 %v2765_v32, %v569_v63 }
  0xdc   : > { %v531_v33 = vpop.f32.mrf.mxu0 }
  0xdd   : > { %v532_v35 = vadd.f32 %v2765_v32, %v531_v33 }
  0xdf   : > { %v673_v36 = vpack.c.bf16 %v532_v35, %v530_v34 }
  0xe1   : > { %761 = vmatmul.bf16.vlgmr.msra.gmra.mxu1 %v673_v36 }
  0xe2   : > { %v571_v3 = vpop.f32.mrf.mxu2 }
  0xe3   : > { %v572_v5 = vadd.f32 %v2765_v32, %v571_v3 }
  0xe4   : > { %v534_v37 = vpop.f32.mrf.mxu0 }
  0xe5   : > { %v535_v41 = vadd.f32 %v2765_v32, %v534_v37  ;;  %v681_v6 = vpack.c.bf16 %v572_v5, %v570_v2  ;;  %v2255_v37 = vld [vmem:[#allocation8 + $0xb8] sm:$0xff] }
  0xe6   : > { %1221 = vmatpush.bf16.msrb.mxu3 %v2255_v37 }
  0xe7   : > { %801 = vmatmul.bf16.vlgmr.msra.gmra.mxu3 %v681_v6 }
  0xea   : > { %v574_v10 = vpop.f32.mrf.mxu2  ;;  %1222 = vmatpush.bf16.msrb.mxu3 %v2254_v45 }
  0xeb   : > { %v575_v14 = vadd.f32 %v2765_v32, %v574_v10 }
  0xec   : > { %v536_v40 = vpop.f32.mrf.mxu0 }
  0xed   : > { %v537_v42 = vadd.f32 %v2765_v32, %v536_v40 }
  0xef   : > { %v674_v43 = vpack.c.bf16 %v537_v42, %v535_v41 }
  0xf1   : > { %766 = vmatmul.bf16.gmra.mxu1 %v674_v43 }
  0xf2   : > { %v576_v15 = vpop.f32.mrf.mxu2 }
  0xf3   : > { %v577_v16 = vadd.f32 %v2765_v32, %v576_v15 }
  0xf4   : > { %v539_v44 = vpop.f32.mrf.mxu0 }
  0xf5   : > { %v540_v48 = vadd.f32 %v2765_v32, %v539_v44  ;;  %v682_v17 = vpack.c.bf16 %v577_v16, %v575_v14  ;;  %v2250_v14 = vld [vmem:[#allocation8 + $0x90] sm:$0xff] }
  0xf7   : > { %806 = vmatmul.bf16.gmra.mxu3 %v682_v17 }
  0xfa   : > { %v579_v21 = vpop.f32.mrf.mxu2 }
  0xfb   : > { %v580_v24 = vadd.f32 %v2765_v32, %v579_v21 }
  0xfc   : > { %v541_v47 = vpop.f32.mrf.mxu0 }
  0xfd   : > { %v542_v49 = vadd.f32 %v2765_v32, %v541_v47 }
  0xff   : > { %v675_v50 = vpack.c.bf16 %v542_v49, %v540_v48 }
 0x101   : > { %771 = vmatmul.bf16.gmra.mxu1 %v675_v50 }
 0x102   : > { %v581_v25 = vpop.f32.mrf.mxu2 }
 0x103   : > { %v582_v26 = vadd.f32 %v2765_v32, %v581_v25 }
 0x104   : > { %v544_v51 = vpop.f32.mrf.mxu0 }
 0x105   : > { %v545_v55 = vadd.f32 %v2765_v32, %v544_v51  ;;  %v683_v27 = vpack.c.bf16 %v582_v26, %v580_v24 }
 0x107   : > { %811 = vmatmul.bf16.gmra.mxu3 %v683_v27 }
 0x10a   : > { %v584_v31 = vpop.f32.mrf.mxu2 }
 0x10b   : > { %v585_v34 = vadd.f32 %v2765_v32, %v584_v31 }
 0x10c   : > { %v546_v54 = vpop.f32.mrf.mxu0 }
 0x10d   : > { %v547_v56 = vadd.f32 %v2765_v32, %v546_v54  ;;  %v2253_v54 = vld [vmem:[#allocation8 + $0xa8] sm:$0xff] }
 0x10e   : > { %1223 = vmatpush.bf16.msrb.mxu3 %v2253_v54 }
 0x10f   : > { %v676_v57 = vpack.c.bf16 %v547_v56, %v545_v55 }
 0x111   : > { %776 = vmatmul.bf16.gmra.mxu1 %v676_v57 }
 0x112   : > { %v586_v35 = vpop.f32.mrf.mxu2 }
 0x113   : > { %v587_v36 = vadd.f32 %v2765_v32, %v586_v35 }
 0x114   : > { %v549_v58 = vpop.f32.mrf.mxu0 }
 0x115   : > { %v550_v61 = vadd.f32 %v2765_v32, %v549_v58  ;;  %v684_v38 = vpack.c.bf16 %v587_v36, %v585_v34  ;;  %v2262_v36 = vld [vmem:[#allocation8 + $0xf0] sm:$0xff] }
 0x117   : > { %816 = vmatmul.bf16.gmra.mxu3 %v684_v38 }
 0x11a   : > { %v589_v39 = vpop.f32.mrf.mxu2 }
 0x11b   : > { %v590_v41 = vadd.f32 %v2765_v32, %v589_v39 }
 0x11c   : > { %v551_v60 = vpop.f32.mrf.mxu0 }
 0x11d   : > { %v552_v62 = vadd.f32 %v2765_v32, %v551_v60 }
 0x11f   : > { %v677_v0 = vpack.c.bf16 %v552_v62, %v550_v61 }
 0x121   : > { %781 = vmatmul.bf16.gmra.mxu1 %v677_v0  ;;  %v2252_v0 = vld [vmem:[#allocation8 + $0xa0] sm:$0xff] }
 0x122   : > { %v591_v42 = vpop.f32.mrf.mxu2  ;;  %1224 = vmatpush.bf16.msrb.mxu3 %v2252_v0 }
 0x123   : > { %v592_v44 = vadd.f32 %v2765_v32, %v591_v42 }
 0x124   : > { %v554_v1 = vpop.f32.mrf.mxu0 }
 0x125   : > { %v555_v8 = vadd.f32 %v2765_v32, %v554_v1  ;;  %v685_v47 = vpack.c.bf16 %v592_v44, %v590_v41 }
 0x127   : > { %821 = vmatmul.bf16.gmra.mxu3 %v685_v47 }
 0x12a   : > { %v594_v48 = vpop.f32.mrf.mxu2 }
 0x12b   : > { %v595_v50 = vadd.f32 %v2765_v32, %v594_v48 }
 0x12c   : > { %v556_v7 = vpop.f32.mrf.mxu0 }
 0x12d   : > { %v557_v9 = vadd.f32 %v2765_v32, %v556_v7 }
 0x12f   : > { %v678_v11 = vpack.c.bf16 %v557_v9, %v555_v8  ;;  %v2251_v9 = vld [vmem:[#allocation8 + $0x98] sm:$0xff] }
 0x130   : > { %1225 = vmatpush.bf16.msrb.mxu3 %v2251_v9 }
 0x131   : > { %786 = vmatmul.bf16.gmra.mxu1 %v678_v11 }
 0x132   : > { %v596_v51 = vpop.f32.mrf.mxu2 }
 0x133   : > { %v597_v53 = vadd.f32 %v2765_v32, %v596_v51 }
 0x134   : > { %v559_v13 = vpop.f32.mrf.mxu0  ;;  %1226 = vmatpush.bf16.msrb.mxu3 %v2250_v14 }
 0x135   : > { %v560_v19 = vadd.f32 %v2765_v32, %v559_v13  ;;  %v686_v56 = vpack.c.bf16 %v597_v53, %v595_v50  ;;  %v2260_v50 = vld [vmem:[#allocation8 + $0xe0] sm:$0xff] }
 0x137   : > { %826 = vmatmul.bf16.gmra.mxu3 %v686_v56 }
 0x13a   : > { %v599_v57 = vpop.f32.mrf.mxu2 }
 0x13b   : > { %v600_v59 = vadd.f32 %v2765_v32, %v599_v57  ;;  %v2259_v57 = vld [vmem:[#allocation8 + $0xd8] sm:$0xff] }
 0x13c   : > { %v561_v18 = vpop.f32.mrf.mxu0 }
 0x13d   : > { %v562_v20 = vadd.f32 %v2765_v32, %v561_v18  ;;  %v2249_v18 = vld [vmem:[#allocation8 + $0x88] sm:$0xff] }
 0x13e   : > { %1227 = vmatpush.bf16.msrb.mxu3 %v2249_v18 }
 0x13f   : > { %v679_v22 = vpack.c.bf16 %v562_v20, %v560_v19  ;;  %v2248_v19 = vld [vmem:[#allocation8 + $0x80] sm:$0xff] }
 0x141   : > { %791 = vmatmul.bf16.gmra.mxu1 %v679_v22 }
 0x142   : > { %v601_v60 = vpop.f32.mrf.mxu2  ;;  %1228 = vmatpush.bf16.msrb.mxu3 %v2248_v19  ;;  %v2271_v19 = vld [vmem:[#allocation9 + $0x38] sm:$0xff] }
 0x143   : > { %v602_v62 = vadd.f32 %v2765_v32, %v601_v60  ;;  %1692 = vmatpush.bf16.msrb.mxu1 %v2271_v19 }
 0x144   : > { %v564_v23 = vpop.f32.mrf.mxu0 }
 0x145   : > { %v565_v29 = vadd.f32 %v2765_v32, %v564_v23  ;;  %v687_v1 = vpack.c.bf16 %v602_v62, %v600_v59 }
 0x147   : > { %831 = vmatmul.bf16.gmra.mxu3 %v687_v1 }
 0x14a   : > { %v604_v2 = vpop.f32.mrf.mxu2 }
 0x14b   : > { %v605_v4 = vadd.f32 %v2765_v32, %v604_v2 }
 0x14c   : > { %v566_v28 = vpop.f32.mrf.mxu0 }
 0x14d   : > { %v567_v30 = vadd.f32 %v2765_v32, %v566_v28 }
 0x14f   : > { %v680_v33 = vpack.c.bf16 %v567_v30, %v565_v29  ;;  %v2263_v29 = vld [vmem:[#allocation8 + $0xf8] sm:$0xff] }
 0x150   : > { %1455 = vmatpush.bf16.msrb.mxu0 %v2263_v29 }
 0x151   : > { %796 = vmatmul.bf16.gmra.mxu1 %v680_v33 }
 0x152   : > { %v606_v5 = vpop.f32.mrf.mxu2 }
 0x153   : > { %v607_v7 = vadd.f32 %v2765_v32, %v606_v5 }
 0x154   : > { %1456 = vmatpush.bf16.msrb.mxu0 %v2262_v36 }
 0x155   : > { %v688_v10 = vpack.c.bf16 %v607_v7, %v605_v4 }
 0x157   : > { %836 = vmatmul.bf16.gmra.mxu3 %v688_v10 }
 0x15e   : > { %v762_v40 = vpop.f32.mrf.mxu1 }
 0x166   : > { %v764_v43 = vpop.f32.mrf.mxu1 }
 0x167   : > { %v906_v46 = vpack.c.bf16 %v764_v43, %v762_v40  ;;  %v2261_v43 = vld [vmem:[#allocation8 + $0xe8] sm:$0xff] }
 0x168   : > { %1457 = vmatpush.bf16.msrb.mxu0 %v2261_v43 }
 0x169   : > { %995 = vmatmul.bf16.vlgmr.msrb.gmra.mxu2 %v906_v46 }
 0x16a   : > { %v802_v20 = vpop.f32.mrf.mxu3 }
 0x16c   : > { %1458 = vmatpush.bf16.msrb.mxu0 %v2260_v50 }
 0x16e   : > { %v767_v49 = vpop.f32.mrf.mxu1 }
 0x170   : > { %1459 = vmatpush.bf16.msrb.mxu0 %v2259_v57 }
 0x172   : > { %v804_v23 = vpop.f32.mrf.mxu3 }
 0x173   : > { %v914_v31 = vpack.c.bf16 %v804_v23, %v802_v20  ;;  %v2270_v23 = vld [vmem:[#allocation9 + $0x30] sm:$0xff] }
 0x174   : > { %1693 = vmatpush.bf16.msrb.mxu1 %v2270_v23 }
 0x176   : > { %v769_v52 = vpop.f32.mrf.mxu1 }
 0x177   : > { %v907_v55 = vpack.c.bf16 %v769_v52, %v767_v49 }
 0x179   : > { %1000 = vmatmul.bf16.gmra.mxu2 %v907_v55 }
 0x17a   : > { %v807_v25 = vpop.f32.mrf.mxu3 }
 0x17e   : > { %v772_v58 = vpop.f32.mrf.mxu1 }
 0x182   : > { %v809_v28 = vpop.f32.mrf.mxu3 }
 0x183   : > { %v915_v38 = vpack.c.bf16 %v809_v28, %v807_v25 }
 0x186   : > { %v774_v61 = vpop.f32.mrf.mxu1 }
 0x187   : > { %v908_v63 = vpack.c.bf16 %v774_v61, %v772_v58 }
 0x189   : > { %1005 = vmatmul.bf16.gmra.mxu2 %v908_v63  ;;  %v2258_v63 = vld [vmem:[#allocation8 + $0xd0] sm:$0xff] }
 0x18a   : > { %v812_v30 = vpop.f32.mrf.mxu3  ;;  %1460 = vmatpush.bf16.msrb.mxu0 %v2258_v63 }
 0x18e   : > { %v777_v3 = vpop.f32.mrf.mxu1 }
 0x192   : > { %v814_v34 = vpop.f32.mrf.mxu3 }
 0x193   : > { %v916_v45 = vpack.c.bf16 %v814_v34, %v812_v30  ;;  %v2269_v30 = vld [vmem:[#allocation9 + $0x28] sm:$0xff] }
 0x194   : > { %1694 = vmatpush.bf16.msrb.mxu1 %v2269_v30 }
 0x196   : > { %v779_v6 = vpop.f32.mrf.mxu1 }
 0x197   : > { %v909_v8 = vpack.c.bf16 %v779_v6, %v777_v3  ;;  %v2257_v6 = vld [vmem:[#allocation8 + $0xc8] sm:$0xff] }
 0x198   : > { %1461 = vmatpush.bf16.msrb.mxu0 %v2257_v6 }
 0x199   : > { %1010 = vmatmul.bf16.gmra.mxu2 %v909_v8 }
 0x19a   : > { %v817_v39 = vpop.f32.mrf.mxu3 }
 0x19e   : > { %v782_v11 = vpop.f32.mrf.mxu1 }
 0x1a2   : > { %v819_v42 = vpop.f32.mrf.mxu3 }
 0x1a3   : > { %v917_v51 = vpack.c.bf16 %v819_v42, %v817_v39 }
 0x1a6   : > { %v784_v12 = vpop.f32.mrf.mxu1 }
 0x1a7   : > { %v910_v13 = vpack.c.bf16 %v784_v12, %v782_v11 }
 0x1a9   : > { %1015 = vmatmul.bf16.gmra.mxu2 %v910_v13  ;;  %v2256_v13 = vld [vmem:[#allocation8 + $0xc0] sm:$0xff] }
 0x1aa   : > { %v822_v47 = vpop.f32.mrf.mxu3  ;;  %1462 = vmatpush.bf16.msrb.mxu0 %v2256_v13 }
 0x1ae   : > { %v787_v15 = vpop.f32.mrf.mxu1 }
 0x1b2   : > { %v824_v52 = vpop.f32.mrf.mxu3 }
 0x1b3   : > { %v918_v58 = vpack.c.bf16 %v824_v52, %v822_v47  ;;  %v2266_v52 = vld [vmem:[#allocation9 + $0x10] sm:$0xff] }
 0x1b6   : > { %v789_v16 = vpop.f32.mrf.mxu1 }
 0x1b7   : > { %v911_v17 = vpack.c.bf16 %v789_v16, %v787_v15 }
 0x1b9   : > { %1020 = vmatmul.bf16.gmra.mxu2 %v911_v17 }
 0x1ba   : > { %v827_v54 = vpop.f32.mrf.mxu3 }
 0x1be   : > { %v792_v32 = vpop.f32.mrf.mxu1 }
 0x1c2   : > { %v829_v59 = vpop.f32.mrf.mxu3 }
 0x1c3   : > { %v919_v1 = vpack.c.bf16 %v829_v59, %v827_v54 }
 0x1c6   : > { %v794_v21 = vpop.f32.mrf.mxu1 }
 0x1c7   : > { %v912_v22 = vpack.c.bf16 %v794_v21, %v792_v32 }
 0x1c9   : > { %1025 = vmatmul.bf16.gmra.mxu2 %v912_v22 }
 0x1ca   : > { %v832_v0 = vpop.f32.mrf.mxu3 }
 0x1ce   : > { %v797_v24 = vpop.f32.mrf.mxu1 }
 0x1d2   : > { %v834_v3 = vpop.f32.mrf.mxu3 }
 0x1d3   : > { %v920_v7 = vpack.c.bf16 %v834_v3, %v832_v0 }
 0x1d6   : > { %v799_v26 = vpop.f32.mrf.mxu1 }
 0x1d7   : > { %v913_v27 = vpack.c.bf16 %v799_v26, %v797_v24 }
 0x1d9   : > { %1030 = vmatmul.bf16.gmra.mxu2 %v913_v27 }
 0x1da   : > { %v837_v8 = vpop.f32.mrf.mxu3 }
 0x1e2   : > { %v839_v10 = vpop.f32.mrf.mxu3 }
 0x1e3   : > { %v921_v14 = vpack.c.bf16 %v839_v10, %v837_v8 }
 0x1e9   : > { %1035 = vmatmul.bf16.gmra.mxu2 %v914_v31 }
 0x1ec   : > { %v996_v33 = vpop.f32.mrf.mxu2 }
 0x1f4   : > { %v998_v35 = vpop.f32.mrf.mxu2 }
 0x1f5   : > { %v1140_v37 = vpack.c.bf16 %v998_v35, %v996_v33 }
 0x1f7   : > { %1229 = vmatmul.bf16.vlgmr.msrb.gmra.mxu3 %v1140_v37 }
 0x1f9   : > { %1040 = vmatmul.bf16.gmra.mxu2 %v915_v38  ;;  %v2268_v38 = vld [vmem:[#allocation9 + $0x20] sm:$0xff] }
 0x1fa   : > { %1695 = vmatpush.bf16.msrb.mxu1 %v2268_v38 }
 0x1fc   : > { %v1001_v40 = vpop.f32.mrf.mxu2 }
 0x204   : > { %v1003_v41 = vpop.f32.mrf.mxu2 }
 0x205   : > { %v1141_v44 = vpack.c.bf16 %v1003_v41, %v1001_v40 }
 0x207   : > { %1234 = vmatmul.bf16.gmra.mxu3 %v1141_v44 }
 0x209   : > { %1045 = vmatmul.bf16.gmra.mxu2 %v916_v45  ;;  %v2267_v45 = vld [vmem:[#allocation9 + $0x18] sm:$0xff] }
 0x20a   : > { %1696 = vmatpush.bf16.msrb.mxu1 %v2267_v45 }
 0x20c   : > { %v1006_v46 = vpop.f32.mrf.mxu2 }
 0x20e   : > { %1697 = vmatpush.bf16.msrb.mxu1 %v2266_v52 }
 0x214   : > { %v1008_v48 = vpop.f32.mrf.mxu2 }
 0x215   : > { %v1142_v49 = vpack.c.bf16 %v1008_v48, %v1006_v46 }
 0x217   : > { %1239 = vmatmul.bf16.gmra.mxu3 %v1142_v49 }
 0x219   : > { %1050 = vmatmul.bf16.gmra.mxu2 %v917_v51 }
 0x21c   : > { %v1011_v53 = vpop.f32.mrf.mxu2 }
 0x224   : > { %v1013_v55 = vpop.f32.mrf.mxu2 }
 0x225   : > { %v1143_v56 = vpack.c.bf16 %v1013_v55, %v1011_v53 }
 0x227   : > { %1244 = vmatmul.bf16.gmra.mxu3 %v1143_v56 }
 0x229   : > { %1055 = vmatmul.bf16.gmra.mxu2 %v918_v58  ;;  %v2265_v58 = vld [vmem:[#allocation9 + $0x8] sm:$0xff] }
 0x22a   : > { %1698 = vmatpush.bf16.msrb.mxu1 %v2265_v58 }
 0x22c   : > { %v1016_v60 = vpop.f32.mrf.mxu2 }
 0x234   : > { %v1018_v61 = vpop.f32.mrf.mxu2 }
 0x235   : > { %v1144_v62 = vpack.c.bf16 %v1018_v61, %v1016_v60 }
 0x237   : > { %1249 = vmatmul.bf16.gmra.mxu3 %v1144_v62 }
 0x239   : > { %1060 = vmatmul.bf16.gmra.mxu2 %v919_v1  ;;  %v2264_v1 = vld [vmem:[#allocation9] sm:$0xff] }
 0x23a   : > { %1699 = vmatpush.bf16.msrb.mxu1 %v2264_v1 }
 0x23c   : > { %v1021_v2 = vpop.f32.mrf.mxu2 }
 0x244   : > { %v1023_v4 = vpop.f32.mrf.mxu2 }
 0x245   : > { %v1145_v5 = vpack.c.bf16 %v1023_v4, %v1021_v2 }
 0x247   : > { %1254 = vmatmul.bf16.gmra.mxu3 %v1145_v5 }
 0x249   : > { %1065 = vmatmul.bf16.gmra.mxu2 %v920_v7 }
 0x24c   : > { %v1026_v9 = vpop.f32.mrf.mxu2 }
 0x254   : > { %v1028_v11 = vpop.f32.mrf.mxu2 }
 0x255   : > { %v1146_v12 = vpack.c.bf16 %v1028_v11, %v1026_v9 }
 0x257   : > { %1259 = vmatmul.bf16.gmra.mxu3 %v1146_v12 }
 0x259   : > { %1070 = vmatmul.bf16.gmra.mxu2 %v921_v14 }
 0x25c   : > { %v1031_v15 = vpop.f32.mrf.mxu2 }
 0x264   : > { %v1033_v16 = vpop.f32.mrf.mxu2 }
 0x265   : > { %v1147_v17 = vpack.c.bf16 %v1033_v16, %v1031_v15 }
 0x267   : > { %1264 = vmatmul.bf16.gmra.mxu3 %v1147_v17 }
 0x26c   : > { %v1036_v18 = vpop.f32.mrf.mxu2 }
 0x274   : > { %v1038_v32 = vpop.f32.mrf.mxu2 }
 0x275   : > { %v1148_v20 = vpack.c.bf16 %v1038_v32, %v1036_v18 }
 0x277   : > { %1269 = vmatmul.bf16.gmra.mxu3 %v1148_v20 }
 0x27a   : > { %v1230_v21 = vpop.f32.mrf.mxu3 }
 0x27c   : > { %v1041_v22 = vpop.f32.mrf.mxu2 }
 0x282   : > { %v1232_v24 = vpop.f32.mrf.mxu3 }
 0x283   : > { %v1374_v25 = vpack.c.bf16 %v1232_v24, %v1230_v21 }
 0x284   : > { %v1043_v26 = vpop.f32.mrf.mxu2 }
 0x285   : > { %v1149_v27 = vpack.c.bf16 %v1043_v26, %v1041_v22  ;;  %1463 = vmatmul.bf16.vlgmr.msrb.gmra.mxu0 %v1374_v25 }
 0x287   : > { %1274 = vmatmul.bf16.gmra.mxu3 %v1149_v27 }
 0x28a   : > { %v1235_v28 = vpop.f32.mrf.mxu3 }
 0x28c   : > { %v1046_v29 = vpop.f32.mrf.mxu2 }
 0x292   : > { %v1237_v31 = vpop.f32.mrf.mxu3 }
 0x293   : > { %v1375_v33 = vpack.c.bf16 %v1237_v31, %v1235_v28 }
 0x294   : > { %v1048_v34 = vpop.f32.mrf.mxu2 }
 0x295   : > { %v1150_v35 = vpack.c.bf16 %v1048_v34, %v1046_v29  ;;  %1468 = vmatmul.bf16.gmra.mxu0 %v1375_v33 }
 0x297   : > { %1279 = vmatmul.bf16.gmra.mxu3 %v1150_v35 }
 0x29a   : > { %v1240_v36 = vpop.f32.mrf.mxu3 }
 0x29c   : > { %v1051_v37 = vpop.f32.mrf.mxu2 }
 0x2a2   : > { %v1242_v39 = vpop.f32.mrf.mxu3 }
 0x2a3   : > { %v1376_v40 = vpack.c.bf16 %v1242_v39, %v1240_v36 }
 0x2a4   : > { %v1053_v41 = vpop.f32.mrf.mxu2 }
 0x2a5   : > { %v1151_v42 = vpack.c.bf16 %v1053_v41, %v1051_v37  ;;  %1473 = vmatmul.bf16.gmra.mxu0 %v1376_v40 }
 0x2a7   : > { %1284 = vmatmul.bf16.gmra.mxu3 %v1151_v42 }
 0x2aa   : > { %v1245_v43 = vpop.f32.mrf.mxu3 }
 0x2ac   : > { %v1056_v44 = vpop.f32.mrf.mxu2 }
 0x2b2   : > { %v1247_v46 = vpop.f32.mrf.mxu3 }
 0x2b3   : > { %v1377_v47 = vpack.c.bf16 %v1247_v46, %v1245_v43 }
 0x2b4   : > { %v1058_v48 = vpop.f32.mrf.mxu2 }
 0x2b5   : > { %v1152_v49 = vpack.c.bf16 %v1058_v48, %v1056_v44  ;;  %1478 = vmatmul.bf16.gmra.mxu0 %v1377_v47 }
 0x2b7   : > { %1289 = vmatmul.bf16.gmra.mxu3 %v1152_v49 }
 0x2ba   : > { %v1250_v50 = vpop.f32.mrf.mxu3 }
 0x2bc   : > { %v1061_v51 = vpop.f32.mrf.mxu2 }
 0x2c2   : > { %v1252_v53 = vpop.f32.mrf.mxu3 }
 0x2c3   : > { %v1378_v54 = vpack.c.bf16 %v1252_v53, %v1250_v50 }
 0x2c4   : > { %v1063_v55 = vpop.f32.mrf.mxu2 }
 0x2c5   : > { %v1153_v56 = vpack.c.bf16 %v1063_v55, %v1061_v51  ;;  %1483 = vmatmul.bf16.gmra.mxu0 %v1378_v54 }
 0x2c7   : > { %1294 = vmatmul.bf16.gmra.mxu3 %v1153_v56 }
 0x2ca   : > { %v1255_v57 = vpop.f32.mrf.mxu3 }
 0x2cc   : > { %v1066_v59 = vpop.f32.mrf.mxu2 }
 0x2d2   : > { %v1257_v60 = vpop.f32.mrf.mxu3 }
 0x2d3   : > { %v1379_v61 = vpack.c.bf16 %v1257_v60, %v1255_v57 }
 0x2d4   : > { %v1068_v62 = vpop.f32.mrf.mxu2 }
 0x2d5   : > { %v1154_v63 = vpack.c.bf16 %v1068_v62, %v1066_v59  ;;  %1488 = vmatmul.bf16.gmra.mxu0 %v1379_v61  ;;  %v2806_v59 = vld [vmem:[%s2913_s5] ss:$0 sm:$0xff] }
 0x2d7   : > { %1299 = vmatmul.bf16.gmra.mxu3 %v1154_v63 }
 0x2da   : > { %v1260_v0 = vpop.f32.mrf.mxu3 }
 0x2dc   : > { %v1071_v2 = vpop.f32.mrf.mxu2 }
 0x2e2   : > { %v1262_v3 = vpop.f32.mrf.mxu3 }
 0x2e3   : > { %v1380_v4 = vpack.c.bf16 %v1262_v3, %v1260_v0 }
 0x2e4   : > { %v1073_v5 = vpop.f32.mrf.mxu2 }
 0x2e5   : > { %v1155_v6 = vpack.c.bf16 %v1073_v5, %v1071_v2  ;;  %1493 = vmatmul.bf16.gmra.mxu0 %v1380_v4 }
 0x2e7   : > { %1304 = vmatmul.bf16.gmra.mxu3 %v1155_v6 }
 0x2ea   : > { %v1265_v7 = vpop.f32.mrf.mxu3 }
 0x2f2   : > { %v1267_v8 = vpop.f32.mrf.mxu3 }
 0x2f3   : > { %v1381_v9 = vpack.c.bf16 %v1267_v8, %v1265_v7 }
 0x2f5   : > { %1498 = vmatmul.bf16.gmra.mxu0 %v1381_v9 }
 0x2fa   : > { %v1270_v10 = vpop.f32.mrf.mxu3 }
 0x302   : > { %v1272_v11 = vpop.f32.mrf.mxu3  ;;  %v1464_v12 = vpop.f32.mrf.mxu0 }
 0x303   : > { %v1382_v13 = vpack.c.bf16 %v1272_v11, %v1270_v10 }
 0x305   : > { %1503 = vmatmul.bf16.gmra.mxu0 %v1382_v13 }
 0x30a   : > { %v1275_v14 = vpop.f32.mrf.mxu3  ;;  %v1466_v15 = vpop.f32.mrf.mxu0 }
 0x30b   : > { %v1608_v16 = vpack.c.bf16 %v1466_v15, %v1464_v12 }
 0x30d   : > { %1700 = vmatmul.bf16.vlgmr.msrb.gmra.mxu1 %v1608_v16 }
 0x312   : > { %v1277_v17 = vpop.f32.mrf.mxu3  ;;  %v1469_v18 = vpop.f32.mrf.mxu0 }
 0x313   : > { %v1383_v19 = vpack.c.bf16 %v1277_v17, %v1275_v14 }
 0x315   : > { %1508 = vmatmul.bf16.gmra.mxu0 %v1383_v19 }
 0x31a   : > { %v1280_v32 = vpop.f32.mrf.mxu3  ;;  %v1471_v20 = vpop.f32.mrf.mxu0 }
 0x31b   : > { %v1609_v21 = vpack.c.bf16 %v1471_v20, %v1469_v18 }
 0x31d   : > { %1705 = vmatmul.bf16.gmra.mxu1 %v1609_v21 }
 0x322   : > { %v1282_v22 = vpop.f32.mrf.mxu3  ;;  %v1474_v23 = vpop.f32.mrf.mxu0 }
 0x323   : > { %v1384_v24 = vpack.c.bf16 %v1282_v22, %v1280_v32 }
 0x325   : > { %1513 = vmatmul.bf16.gmra.mxu0 %v1384_v24 }
 0x32a   : > { %v1285_v25 = vpop.f32.mrf.mxu3  ;;  %v1476_v26 = vpop.f32.mrf.mxu0 }
 0x32b   : > { %v1610_v27 = vpack.c.bf16 %v1476_v26, %v1474_v23 }
 0x32d   : > { %1710 = vmatmul.bf16.gmra.mxu1 %v1610_v27 }
 0x332   : > { %v1287_v28 = vpop.f32.mrf.mxu3  ;;  %v1479_v29 = vpop.f32.mrf.mxu0 }
 0x333   : > { %v1385_v30 = vpack.c.bf16 %v1287_v28, %v1285_v25 }
 0x335   : > { %1518 = vmatmul.bf16.gmra.mxu0 %v1385_v30 }
 0x33a   : > { %v1290_v31 = vpop.f32.mrf.mxu3  ;;  %v1481_v33 = vpop.f32.mrf.mxu0 }
 0x33b   : > { %v1611_v34 = vpack.c.bf16 %v1481_v33, %v1479_v29 }
 0x33d   : > { %1715 = vmatmul.bf16.gmra.mxu1 %v1611_v34 }
 0x342   : > { %v1292_v35 = vpop.f32.mrf.mxu3  ;;  %v1484_v36 = vpop.f32.mrf.mxu0 }
 0x343   : > { %v1386_v37 = vpack.c.bf16 %v1292_v35, %v1290_v31 }
 0x345   : > { %1523 = vmatmul.bf16.gmra.mxu0 %v1386_v37 }
 0x34a   : > { %v1295_v38 = vpop.f32.mrf.mxu3  ;;  %v1486_v39 = vpop.f32.mrf.mxu0 }
 0x34b   : > { %v1612_v40 = vpack.c.bf16 %v1486_v39, %v1484_v36 }
 0x34d   : > { %1720 = vmatmul.bf16.gmra.mxu1 %v1612_v40 }
 0x352   : > { %v1297_v41 = vpop.f32.mrf.mxu3  ;;  %v1489_v42 = vpop.f32.mrf.mxu0 }
 0x353   : > { %v1387_v43 = vpack.c.bf16 %v1297_v41, %v1295_v38 }
 0x355   : > { %1528 = vmatmul.bf16.gmra.mxu0 %v1387_v43 }
 0x35a   : > { %v1300_v44 = vpop.f32.mrf.mxu3  ;;  %v1491_v45 = vpop.f32.mrf.mxu0 }
 0x35b   : > { %v1613_v46 = vpack.c.bf16 %v1491_v45, %v1489_v42 }
 0x35d   : > { %1725 = vmatmul.bf16.gmra.mxu1 %v1613_v46 }
 0x362   : > { %v1302_v47 = vpop.f32.mrf.mxu3  ;;  %v1494_v48 = vpop.f32.mrf.mxu0 }
 0x363   : > { %v1388_v49 = vpack.c.bf16 %v1302_v47, %v1300_v44 }
 0x365   : > { %1533 = vmatmul.bf16.gmra.mxu0 %v1388_v49 }
 0x36a   : > { %v1305_v50 = vpop.f32.mrf.mxu3  ;;  %v1496_v51 = vpop.f32.mrf.mxu0 }
 0x36b   : > { %v1614_v52 = vpack.c.bf16 %v1496_v51, %v1494_v48 }
 0x36d   : > { %1730 = vmatmul.bf16.gmra.mxu1 %v1614_v52 }
 0x372   : > { %v1307_v53 = vpop.f32.mrf.mxu3  ;;  %v1499_v54 = vpop.f32.mrf.mxu0 }
 0x373   : > { %v1389_v55 = vpack.c.bf16 %v1307_v53, %v1305_v50 }
 0x375   : > { %1538 = vmatmul.bf16.gmra.mxu0 %v1389_v55 }
 0x37a   : > { %v1501_v56 = vpop.f32.mrf.mxu0 }
 0x37b   : > { %v1615_v57 = vpack.c.bf16 %v1501_v56, %v1499_v54 }
 0x37d   : > { %1735 = vmatmul.bf16.gmra.mxu1 %v1615_v57 }
 0x382   : > { %v1504_v58 = vpop.f32.mrf.mxu0 }
 0x38a   : > { %v1506_v60 = vpop.f32.mrf.mxu0  ;;  %v1701_v61 = vpop.f32.mrf.mxu1 }
 0x38b   : > { %v1616_v62 = vpack.c.bf16 %v1506_v60, %v1504_v58  ;;  %v1702_v63 = vadd.f32 %v2806_v59, %v1701_v61 }
 0x38d   : > { %1781 = vst [vmem:[%s2809_s10] sm:$0xff] %v1702_v63  ;;  %1740 = vmatmul.bf16.gmra.mxu1 %v1616_v62 }
 0x392   : > { %v1509_v0 = vpop.f32.mrf.mxu0  ;;  %v1703_v1 = vpop.f32.mrf.mxu1 }
 0x393   : > { %v1704_v2 = vadd.f32 %v2806_v59, %v1703_v1 }
 0x395   : > { %1782 = vst [vmem:[%s2809_s10 + $0x8] sm:$0xff] %v1704_v2 }
 0x39a   : > { %v1511_v3 = vpop.f32.mrf.mxu0  ;;  %v1706_v4 = vpop.f32.mrf.mxu1 }
 0x39b   : > { %v1617_v5 = vpack.c.bf16 %v1511_v3, %v1509_v0  ;;  %v1707_v6 = vadd.f32 %v2806_v59, %v1706_v4 }
 0x39d   : > { %1783 = vst [vmem:[%s2809_s10 + $0x10] sm:$0xff] %v1707_v6  ;;  %1745 = vmatmul.bf16.gmra.mxu1 %v1617_v5 }
 0x3a2   : > { %v1514_v7 = vpop.f32.mrf.mxu0  ;;  %v1708_v8 = vpop.f32.mrf.mxu1 }
 0x3a3   : > { %v1709_v9 = vadd.f32 %v2806_v59, %v1708_v8 }
 0x3a5   : > { %1784 = vst [vmem:[%s2809_s10 + $0x18] sm:$0xff] %v1709_v9 }
 0x3aa   : > { %v1516_v10 = vpop.f32.mrf.mxu0  ;;  %v1711_v11 = vpop.f32.mrf.mxu1 }
 0x3ab   : > { %v1618_v12 = vpack.c.bf16 %v1516_v10, %v1514_v7  ;;  %v1712_v13 = vadd.f32 %v2806_v59, %v1711_v11 }
 0x3ad   : > { %1785 = vst [vmem:[%s2809_s10 + $0x20] sm:$0xff] %v1712_v13  ;;  %1750 = vmatmul.bf16.gmra.mxu1 %v1618_v12 }
 0x3b2   : > { %v1519_v14 = vpop.f32.mrf.mxu0  ;;  %v1713_v15 = vpop.f32.mrf.mxu1 }
 0x3b3   : > { %v1714_v16 = vadd.f32 %v2806_v59, %v1713_v15 }
 0x3b5   : > { %1786 = vst [vmem:[%s2809_s10 + $0x28] sm:$0xff] %v1714_v16 }
 0x3ba   : > { %v1521_v17 = vpop.f32.mrf.mxu0  ;;  %v1716_v18 = vpop.f32.mrf.mxu1 }
 0x3bb   : > { %v1619_v19 = vpack.c.bf16 %v1521_v17, %v1519_v14  ;;  %v1717_v32 = vadd.f32 %v2806_v59, %v1716_v18 }
 0x3bd   : > { %1787 = vst [vmem:[%s2809_s10 + $0x30] sm:$0xff] %v1717_v32  ;;  %1755 = vmatmul.bf16.gmra.mxu1 %v1619_v19 }
 0x3c2   : > { %v1524_v20 = vpop.f32.mrf.mxu0  ;;  %v1718_v21 = vpop.f32.mrf.mxu1 }
 0x3c3   : > { %v1719_v22 = vadd.f32 %v2806_v59, %v1718_v21 }
 0x3c5   : > { %1788 = vst [vmem:[%s2809_s10 + $0x38] sm:$0xff] %v1719_v22 }
 0x3ca   : > { %v1526_v23 = vpop.f32.mrf.mxu0  ;;  %v1721_v24 = vpop.f32.mrf.mxu1 }
 0x3cb   : > { %v1620_v25 = vpack.c.bf16 %v1526_v23, %v1524_v20  ;;  %v1722_v26 = vadd.f32 %v2806_v59, %v1721_v24 }
 0x3cd   : > { %1789 = vst [vmem:[%s2809_s10 + $0x40] sm:$0xff] %v1722_v26  ;;  %1760 = vmatmul.bf16.gmra.mxu1 %v1620_v25 }
 0x3d2   : > { %v1529_v27 = vpop.f32.mrf.mxu0  ;;  %v1723_v28 = vpop.f32.mrf.mxu1 }
 0x3d3   : > { %v1724_v29 = vadd.f32 %v2806_v59, %v1723_v28 }
 0x3d5   : > { %1790 = vst [vmem:[%s2809_s10 + $0x48] sm:$0xff] %v1724_v29 }
 0x3da   : > { %v1531_v30 = vpop.f32.mrf.mxu0  ;;  %v1726_v31 = vpop.f32.mrf.mxu1 }
 0x3db   : > { %v1621_v33 = vpack.c.bf16 %v1531_v30, %v1529_v27  ;;  %v1727_v34 = vadd.f32 %v2806_v59, %v1726_v31 }
 0x3dd   : > { %1791 = vst [vmem:[%s2809_s10 + $0x50] sm:$0xff] %v1727_v34  ;;  %1765 = vmatmul.bf16.gmra.mxu1 %v1621_v33 }
 0x3e2   : > { %v1534_v35 = vpop.f32.mrf.mxu0  ;;  %v1728_v36 = vpop.f32.mrf.mxu1 }
 0x3e3   : > { %v1729_v37 = vadd.f32 %v2806_v59, %v1728_v36 }
 0x3e5   : > { %1792 = vst [vmem:[%s2809_s10 + $0x58] sm:$0xff] %v1729_v37 }
 0x3ea   : > { %v1536_v38 = vpop.f32.mrf.mxu0  ;;  %v1731_v39 = vpop.f32.mrf.mxu1 }
 0x3eb   : > { %v1622_v40 = vpack.c.bf16 %v1536_v38, %v1534_v35  ;;  %v1732_v41 = vadd.f32 %v2806_v59, %v1731_v39 }
 0x3ed   : > { %1793 = vst [vmem:[%s2809_s10 + $0x60] sm:$0xff] %v1732_v41  ;;  %1770 = vmatmul.bf16.gmra.mxu1 %v1622_v40 }
 0x3f2   : > { %v1539_v42 = vpop.f32.mrf.mxu0  ;;  %v1733_v43 = vpop.f32.mrf.mxu1 }
 0x3f3   : > { %v1734_v44 = vadd.f32 %v2806_v59, %v1733_v43 }
 0x3f5   : > { %1794 = vst [vmem:[%s2809_s10 + $0x68] sm:$0xff] %v1734_v44 }
 0x3fa   : > { %v1541_v45 = vpop.f32.mrf.mxu0  ;;  %v1736_v46 = vpop.f32.mrf.mxu1 }
 0x3fb   : > { %v1623_v47 = vpack.c.bf16 %v1541_v45, %v1539_v42  ;;  %v1737_v48 = vadd.f32 %v2806_v59, %v1736_v46 }
 0x3fd   : > { %1795 = vst [vmem:[%s2809_s10 + $0x70] sm:$0xff] %v1737_v48  ;;  %1775 = vmatmul.bf16.gmra.mxu1 %v1623_v47 }
 0x402   : > { %v1738_v49 = vpop.f32.mrf.mxu1 }
 0x403   : > { %v1739_v50 = vadd.f32 %v2806_v59, %v1738_v49 }
 0x405   : > { %1796 = vst [vmem:[%s2809_s10 + $0x78] sm:$0xff] %v1739_v50 }
 0x40a   : > { %v1741_v51 = vpop.f32.mrf.mxu1 }
 0x40b   : > { %v1742_v52 = vadd.f32 %v2806_v59, %v1741_v51 }
 0x40d   : > { %1797 = vst [vmem:[%s2809_s10 + $0x80] sm:$0xff] %v1742_v52 }
 0x412   : > { %v1743_v53 = vpop.f32.mrf.mxu1 }
 0x413   : > { %v1744_v54 = vadd.f32 %v2806_v59, %v1743_v53 }
 0x415   : > { %1798 = vst [vmem:[%s2809_s10 + $0x88] sm:$0xff] %v1744_v54 }
 0x41a   : > { %v1746_v55 = vpop.f32.mrf.mxu1 }
 0x41b   : > { %v1747_v56 = vadd.f32 %v2806_v59, %v1746_v55 }
 0x41d   : > { %1799 = vst [vmem:[%s2809_s10 + $0x90] sm:$0xff] %v1747_v56 }
 0x422   : > { %v1748_v57 = vpop.f32.mrf.mxu1 }
 0x423   : > { %v1749_v58 = vadd.f32 %v2806_v59, %v1748_v57 }
 0x425   : > { %1800 = vst [vmem:[%s2809_s10 + $0x98] sm:$0xff] %v1749_v58 }
 0x42a   : > { %v1751_v60 = vpop.f32.mrf.mxu1 }
 0x42b   : > { %v1752_v61 = vadd.f32 %v2806_v59, %v1751_v60 }
 0x42d   : > { %1801 = vst [vmem:[%s2809_s10 + $0xa0] sm:$0xff] %v1752_v61 }
 0x432   : > { %v1753_v62 = vpop.f32.mrf.mxu1 }
 0x433   : > { %v1754_v63 = vadd.f32 %v2806_v59, %v1753_v62 }
 0x435   : > { %1802 = vst [vmem:[%s2809_s10 + $0xa8] sm:$0xff] %v1754_v63 }
 0x43a   : > { %v1756_v0 = vpop.f32.mrf.mxu1 }
 0x43b   : > { %v1757_v1 = vadd.f32 %v2806_v59, %v1756_v0 }
 0x43d   : > { %1803 = vst [vmem:[%s2809_s10 + $0xb0] sm:$0xff] %v1757_v1 }
 0x442   : > { %v1758_v2 = vpop.f32.mrf.mxu1 }
 0x443   : > { %v1759_v3 = vadd.f32 %v2806_v59, %v1758_v2 }
 0x445   : > { %1804 = vst [vmem:[%s2809_s10 + $0xb8] sm:$0xff] %v1759_v3 }
 0x44a   : > { %v1761_v4 = vpop.f32.mrf.mxu1 }
 0x44b   : > { %v1762_v5 = vadd.f32 %v2806_v59, %v1761_v4 }
 0x44d   : > { %1805 = vst [vmem:[%s2809_s10 + $0xc0] sm:$0xff] %v1762_v5 }
 0x452   : > { %v1763_v6 = vpop.f32.mrf.mxu1 }
 0x453   : > { %v1764_v7 = vadd.f32 %v2806_v59, %v1763_v6 }
 0x455   : > { %1806 = vst [vmem:[%s2809_s10 + $0xc8] sm:$0xff] %v1764_v7 }
 0x45a   : > { %v1766_v8 = vpop.f32.mrf.mxu1 }
 0x45b   : > { %v1767_v9 = vadd.f32 %v2806_v59, %v1766_v8 }
 0x45d   : > { %1807 = vst [vmem:[%s2809_s10 + $0xd0] sm:$0xff] %v1767_v9 }
 0x462   : > { %v1768_v10 = vpop.f32.mrf.mxu1 }
 0x463   : > { %v1769_v11 = vadd.f32 %v2806_v59, %v1768_v10 }
 0x465   : > { %1808 = vst [vmem:[%s2809_s10 + $0xd8] sm:$0xff] %v1769_v11 }
 0x46a   : > { %v1771_v12 = vpop.f32.mrf.mxu1 }
 0x46b   : > { %v1772_v13 = vadd.f32 %v2806_v59, %v1771_v12 }
 0x46d   : > { %1809 = vst [vmem:[%s2809_s10 + $0xe0] sm:$0xff] %v1772_v13 }
 0x472   : > { %v1773_v14 = vpop.f32.mrf.mxu1 }
 0x473   : > { %v1774_v15 = vadd.f32 %v2806_v59, %v1773_v14 }
 0x475   : > { %1810 = vst [vmem:[%s2809_s10 + $0xe8] sm:$0xff] %v1774_v15 }
 0x47a   : > { %v1776_v16 = vpop.f32.mrf.mxu1 }
 0x47b   : > { %v1777_v17 = vadd.f32 %v2806_v59, %v1776_v16 }
 0x47d   : > { %1811 = vst [vmem:[%s2809_s10 + $0xf0] sm:$0xff] %v1777_v17 }
 0x482   : > { %v1778_v18 = vpop.f32.mrf.mxu1 }
 0x483   : > { %v1779_v19 = vadd.f32 %v2806_v59, %v1778_v18 }
 0x485   : > { %1812 = vst [vmem:[%s2809_s10 + $0xf8] sm:$0xff] %v1779_v19 }
 0x486   : > { %2519 = shalt.err (!%p2516_p10)
}
 0x487   : > { %s2573_s11 = smov 128   ;;  %s2574_s10 = smov 8  }
 0x488   : > { %2303 = dma.vmem_to_hbm [thread:$0]  (%p2701_p3), %s1827_s29, 4096, %s1829_s15, %s1814_s16, %s2573_s11, %s2573_s11, %s2574_s10  }
 0x489 PF: > { %s1843_s17 = sand.u32 1, %s2554_s21   ;;  %p2925_p12 = scmp.ge.s32.totalorder %s2566_s24, 2 }
 0x48a   : > { %s1844_s19 = scalar_lea.sflag [#allocation5], %s1843_s17 }
 0x48b   : > { %p2320_p13 = pnand %p2925_p12, %p2645_p6 }
 0x48d   : > { %p2321_p0 = pneg %p2320_p13 }
 0x48f   : > { %2549 = dma.done.wait (%p2321_p0), %s1844_s19, 4096  }
 0x490   : > { %2551 = vsyncadd (%p2321_p0), %s1844_s19, 4294963200  ;;  %p21_p5 = scmp.ge.s32.totalorder %s2683_s7, 4   ;;  %s2926_s21 = smov %s2558_s22 }
 0x491   : > { %s2927_s22 = smov %s2562_s23  ;;  %s2928_s23 = smov %s2697_s12 }
 0x492   : > { %s2929_s24 = smov %s2683_s7  ;;  %23 = sbr.rel (!%p21_p5) target bundleno = 7 (0x7), region = 104 }
 0x497   :  { %1850 = vsyncpa [#allocation4], 1 }
 0x498   :  { %1852 = vsyncpa [#allocation4 + $0x1], 1 }
 0x499   :  { %1853 = vsyncpa [#allocation7], 1 }
 0x49a   :  { %1854 = vsyncpa [#allocation10], 1 }
 0x49b   :  { %1855 = vsyncpa [#allocation5], 1 }
 0x49c   :  { %1857 = vsyncpa [#allocation5 + $0x1], 1 }

</bundles_post_ra>
